<compile_context>
chip_gen: v6e
topology: v6e:2x2x1
jax: 0.10.0
libtpu: 0.0.40
codegen_flags: <defaults>
</compile_context>

<pallas_src>
import math

import jax
import jax.numpy as jnp
from jax.experimental import pallas as pl
from jax.experimental.pallas import tpu as pltpu

# ----------------------------- configuration -------------------------------
N_TOKENS = 16
EMB = 32
N_HEADS = 4
FF = 64
N_LAYERS = 2
SEQ = 8
BATCH = 2
HEAD_DIM = EMB // N_HEADS
BS = BATCH * SEQ
LN_EPS = 1e-5
OUT_PAD = 128  # lane-dense output width (logits live in [:, :N_TOKENS])


# ------------------------------ fused kernel --------------------------------
def fused_forward_kernel(
    ids_ref,    # (BS, 1)   int32   token ids, batch-major rows (r = b*S + s)
    emb_ref,    # (N_TOKENS, E)     embedding table, pre-scaled by sqrt(E)
    pe_ref,     # (BS, E)           sinusoidal PE, pre-tiled over batch
    w_in_ref,   # (L, E, 3E+E+FF)   [Wqkv(Q pre-scaled) | Wo | W1]
    w2_ref,     # (L, FF, E)
    vec_ref,    # (L, 8, 128)       rows: bqkv,bo,b1,b2,g1,be1,g2,be2
    wdec_ref,   # (E, OUT_PAD)      decoder weight, zero-padded lanes
    bdec_ref,   # (1, OUT_PAD)
    o_ref,      # (BS, OUT_PAD)
):
    f32 = jnp.float32

    # --- embedding lookup as one-hot matmul (keeps the gather on the MXU) ---
    ids = ids_ref[...]                                               # (BS, 1)
    iota = jax.lax.broadcasted_iota(jnp.int32, (BS, N_TOKENS), 1)
    onehot = (ids == iota).astype(f32)                               # (BS, NT)
    x = jnp.dot(onehot, emb_ref[...], preferred_element_type=f32) + pe_ref[...]

    for li in range(N_LAYERS):                 # static 2-iter loop
        w_in = w_in_ref[li]                    # (E, 192)
        w2 = w2_ref[li]                        # (FF, E)
        vec = vec_ref[li]                      # (8, 128)

        wqkv = w_in[:, : 3 * EMB]              # (E, 3E)  (Q part pre-scaled)
        wo = w_in[:, 3 * EMB : 4 * EMB]        # (E, E)
        w1 = w_in[:, 4 * EMB : 4 * EMB + FF]   # (E, FF)

        bqkv = vec[0:1, : 3 * EMB]
        bo = vec[1:2, :EMB]
        b1 = vec[2:3, :FF]
        b2 = vec[3:4, :EMB]
        g1 = vec[4:5, :EMB]
        be1 = vec[5:6, :EMB]
        g2 = vec[6:7, :EMB]
        be2 = vec[7:8, :EMB]

        # --- multi-head self-attention (batched over B via 3-D einsum) ---
        qkv = jnp.dot(x, wqkv, preferred_element_type=f32) + bqkv    # (BS, 3E)

        attn = jnp.zeros((BS, EMB), f32)
        for h in range(N_HEADS):               # static 4-iter loop
            lo = h * HEAD_DIM
            qh = qkv[:, lo : lo + HEAD_DIM].reshape(BATCH, SEQ, HEAD_DIM)
            kh = qkv[:, EMB + lo : EMB + lo + HEAD_DIM].reshape(BATCH, SEQ, HEAD_DIM)
            vh = qkv[:, 2 * EMB + lo : 2 * EMB + lo + HEAD_DIM].reshape(
                BATCH, SEQ, HEAD_DIM
            )
            s = jnp.einsum("bqd,bkd->bqk", qh, kh, preferred_element_type=f32)
            s = s - jnp.max(s, axis=-1, keepdims=True)
            p = jnp.exp(s)
            p = p * pl.reciprocal(jnp.sum(p, axis=-1, keepdims=True), approx=True)
            pv = jnp.einsum("bqk,bkd->bqd", p, vh, preferred_element_type=f32)
            # output projection accumulated per-head: concat_h(pv_h) @ Wo
            attn = attn + jnp.dot(
                pv.reshape(BS, HEAD_DIM),
                wo[lo : lo + HEAD_DIM, :],
                preferred_element_type=f32,
            )
        attn = attn + bo

        # --- residual + layernorm 1 ---
        h1 = x + attn
        mu1 = jnp.mean(h1, axis=-1, keepdims=True)
        var1 = jnp.mean(jnp.square(h1 - mu1), axis=-1, keepdims=True)
        h1n = (h1 - mu1) * jax.lax.rsqrt(var1 + LN_EPS) * g1 + be1

        # --- feed-forward (ReLU) ---
        f = jnp.dot(h1n, w1, preferred_element_type=f32) + b1
        f = jnp.maximum(f, 0.0)
        f = jnp.dot(f, w2, preferred_element_type=f32) + b2

        # --- residual + layernorm 2 ---
        h2 = h1n + f
        mu2 = jnp.mean(h2, axis=-1, keepdims=True)
        var2 = jnp.mean(jnp.square(h2 - mu2), axis=-1, keepdims=True)
        x = (h2 - mu2) * jax.lax.rsqrt(var2 + LN_EPS) * g2 + be2

    # --- linear decoder, lane-dense 128-wide output ---
    o_ref[...] = (
        jnp.dot(x, wdec_ref[...], preferred_element_type=f32) + bdec_ref[...]
    )


# ------------------------------ parameter setup ------------------------------
def make_params(key):
    def nrm(k, shape, std=0.02):
        return (std * jax.random.normal(k, shape)).astype(jnp.float32)

    keys = jax.random.split(key, 4 + N_LAYERS)
    params = {}
    params["embedding"] = nrm(keys[0], (N_TOKENS, EMB), std=1.0)
    params["dec_w"] = nrm(keys[1], (EMB, N_TOKENS))
    params["dec_b"] = jnp.zeros((1, N_TOKENS), jnp.float32)

    layers = []
    for li in range(N_LAYERS):
        lk = jax.random.split(keys[4 + li], 6)
        layer = (
            nrm(lk[0], (EMB, 3 * EMB)),            # wqkv
            jnp.zeros((1, 3 * EMB), jnp.float32),  # bqkv
            nrm(lk[1], (EMB, EMB)),                # wo
            jnp.zeros((1, EMB), jnp.float32),      # bo
            jnp.ones((1, EMB), jnp.float32),       # ln1 gamma
            jnp.zeros((1, EMB), jnp.float32),      # ln1 beta
            nrm(lk[2], (EMB, FF)),                 # w1
            jnp.zeros((1, FF), jnp.float32),       # b1
            nrm(lk[3], (FF, EMB)),                 # w2
            jnp.zeros((1, EMB), jnp.float32),      # b2
            jnp.ones((1, EMB), jnp.float32),       # ln2 gamma
            jnp.zeros((1, EMB), jnp.float32),      # ln2 beta
        )
        layers.append(layer)
    params["layers"] = layers
    return params


def sinusoidal_pe(seq_len, emb):
    pos = jnp.arange(seq_len, dtype=jnp.float32)[:, None]
    div = jnp.exp(
        jnp.arange(0, emb, 2, dtype=jnp.float32) * (-math.log(10000.0) / emb)
    )
    pe = jnp.zeros((seq_len, emb), jnp.float32)
    pe = pe.at[:, 0::2].set(jnp.sin(pos * div))
    pe = pe.at[:, 1::2].set(jnp.cos(pos * div))
    return pe


def pack_params(params):
    """Pack per-layer params into 3 stacked lane-dense slabs + decoder/emb slabs."""
    qscale = 1.0 / math.sqrt(HEAD_DIM)
    w_in_list, w2_list, vec_list = [], [], []
    for (wqkv, bqkv, wo, bo, g1, be1, w1, b1, w2, b2, g2, be2) in params["layers"]:
        # fold 1/sqrt(head_dim) into the Q projection
        wqkv = wqkv.at[:, :EMB].multiply(qscale)
        bqkv = bqkv.at[:, :EMB].multiply(qscale)
        w_in = jnp.concatenate([wqkv, wo, w1], axis=1)          # (E, 192)
        vec = jnp.zeros((8, 128), jnp.float32)
        vec = vec.at[0, : 3 * EMB].set(bqkv[0])
        vec = vec.at[1, :EMB].set(bo[0])
        vec = vec.at[2, :FF].set(b1[0])
        vec = vec.at[3, :EMB].set(b2[0])
        vec = vec.at[4, :EMB].set(g1[0])
        vec = vec.at[5, :EMB].set(be1[0])
        vec = vec.at[6, :EMB].set(g2[0])
        vec = vec.at[7, :EMB].set(be2[0])
        w_in_list.append(w_in)
        w2_list.append(w2)
        vec_list.append(vec)

    wdec = jnp.zeros((EMB, OUT_PAD), jnp.float32).at[:, :N_TOKENS].set(params["dec_w"])
    bdec = jnp.zeros((1, OUT_PAD), jnp.float32).at[0, :N_TOKENS].set(params["dec_b"][0])

    return dict(
        emb=params["embedding"] * math.sqrt(EMB),               # scale baked in
        pe=jnp.tile(sinusoidal_pe(SEQ, EMB), (BATCH, 1)),       # (B*S, E), b-major
        w_in=jnp.stack(w_in_list),                              # (L, E, 192)
        w2=jnp.stack(w2_list),                                  # (L, FF, E)
        vec=jnp.stack(vec_list),                                # (L, 8, 128)
        wdec=wdec,                                              # (E, 128)
        bdec=bdec,                                              # (1, 128)
    )


# ------------------------------ forward pass ---------------------------------
def _vmem_spec():
    return pl.BlockSpec(memory_space=pltpu.MemorySpace.VMEM)


@jax.jit
def small_encoder_decoder_forward(token_ids, packed):
    """token_ids: (SEQ, BATCH) int32  ->  logits (SEQ, BATCH, N_TOKENS)."""
    ids2d = token_ids.T.reshape(BS, 1).astype(jnp.int32)        # batch-major rows
    out = pl.pallas_call(
        fused_forward_kernel,
        out_shape=jax.ShapeDtypeStruct((BS, OUT_PAD), jnp.float32),
        in_specs=[_vmem_spec() for _ in range(8)],
        out_specs=_vmem_spec(),
    )(
        ids2d,
        packed["emb"],
        packed["pe"],
        packed["w_in"],
        packed["w2"],
        packed["vec"],
        packed["wdec"],
        packed["bdec"],
    )
    logits = out[:, :N_TOKENS].reshape(BATCH, SEQ, N_TOKENS)
    return jnp.transpose(logits, (1, 0, 2))                     # (S, B, n_tokens)


# ------------------------------ pure-JAX reference ----------------------------
def _layernorm(h, g, b):
    mu = jnp.mean(h, axis=-1, keepdims=True)
    var = jnp.mean(jnp.square(h - mu), axis=-1, keepdims=True)
    return (h - mu) * jax.lax.rsqrt(var + LN_EPS) * g + b


def reference_forward(token_ids, params):
    emb = params["embedding"][token_ids] * math.sqrt(EMB)        # (S, B, E)
    emb = emb + sinusoidal_pe(SEQ, EMB)[:, None, :]
    x = jnp.transpose(emb, (1, 0, 2))                            # (B, S, E)
    for (wqkv, bqkv, wo, bo, g1, be1, w1, b1, w2, b2, g2, be2) in params["layers"]:
        qkv = x @ wqkv + bqkv
        q, k, v = (
            qkv[..., :EMB],
            qkv[..., EMB : 2 * EMB],
            qkv[..., 2 * EMB :],
        )
        q = q.reshape(BATCH, SEQ, N_HEADS, HEAD_DIM).transpose(0, 2, 1, 3)
        k = k.reshape(BATCH, SEQ, N_HEADS, HEAD_DIM).transpose(0, 2, 1, 3)
        v = v.reshape(BATCH, SEQ, N_HEADS, HEAD_DIM).transpose(0, 2, 1, 3)
        s = jnp.einsum("bhqd,bhkd->bhqk", q, k) / math.sqrt(HEAD_DIM)
        p = jax.nn.softmax(s, axis=-1)
        a = jnp.einsum("bhqk,bhkd->bhqd", p, v).transpose(0, 2, 1, 3)
        a = a.reshape(BATCH, SEQ, EMB) @ wo + bo
        h1n = _layernorm(x + a, g1, be1)
        f = jnp.maximum(h1n @ w1 + b1, 0.0) @ w2 + b2
        x = _layernorm(h1n + f, g2, be2)
    logits = x @ params["dec_w"] + params["dec_b"]
    return jnp.transpose(logits, (1, 0, 2))


# ---------------------------------- main --------------------------------------
if __name__ == "__main__":
    key = jax.random.PRNGKey(0)
    pkey, dkey = jax.random.split(key)

    params = make_params(pkey)
    packed = pack_params(params)
    token_ids = jax.random.randint(dkey, (SEQ, BATCH), 0, N_TOKENS, dtype=jnp.int32)

    logits = small_encoder_decoder_forward(token_ids, packed)
    logits = jax.block_until_ready(logits)

    assert logits.shape == (SEQ, BATCH, N_TOKENS)
    assert jnp.all(jnp.isfinite(logits))

    ref = jax.block_until_ready(reference_forward(token_ids, params))
    assert jnp.allclose(logits, ref, atol=1e-2, rtol=1e-2), (
        float(jnp.max(jnp.abs(logits - ref)))
    )

    print("KERNEL_OK")
</pallas_src>

<mosaic_0001>
module attributes {stable_mosaic.version = 11 : i64} {
  func.func @fused_forward_kernel(%arg0: memref<16x1xi32, #tpu.memory_space<vmem>>, %arg1: memref<16x32xf32, #tpu.memory_space<vmem>>, %arg2: memref<16x32xf32, #tpu.memory_space<vmem>>, %arg3: memref<2x32x192xf32, #tpu.memory_space<vmem>>, %arg4: memref<2x64x32xf32, #tpu.memory_space<vmem>>, %arg5: memref<2x8x128xf32, #tpu.memory_space<vmem>>, %arg6: memref<32x128xf32, #tpu.memory_space<vmem>>, %arg7: memref<1x128xf32, #tpu.memory_space<vmem>>, %arg8: memref<16x128xf32, #tpu.memory_space<vmem>>) attributes {dimension_semantics = [], scalar_prefetch = 0 : i64, scratch_operands = 0 : i64, tpu.core_type = #tpu.core_type<tc>} {
    %c0 = arith.constant 0 : index
    %c0_0 = arith.constant 0 : index
    %0 = vector.load %arg0[%c0, %c0_0] : memref<16x1xi32, #tpu.memory_space<vmem>>, vector<16x1xi32>
    %1 = tpu.iota {dimensions = array<i32: 1>} : vector<16x16xi32>
    %2 = vector.broadcast %0 : vector<16x1xi32> to vector<16x16xi32>
    %3 = arith.cmpi eq, %2, %1 : vector<16x16xi32>
    %4 = arith.extui %3 : vector<16x16xi1> to vector<16x16xi32>
    %5 = arith.sitofp %4 : vector<16x16xi32> to vector<16x16xf32>
    %c0_1 = arith.constant 0 : index
    %c0_2 = arith.constant 0 : index
    %6 = vector.load %arg1[%c0_1, %c0_2] : memref<16x32xf32, #tpu.memory_space<vmem>>, vector<16x32xf32>
    %cst = arith.constant dense<0.000000e+00> : vector<16x32xf32>
    %7 = tpu.matmul %5, %6, %cst {dimension_numbers = #tpu.dot_dimension_numbers<[1], [0], [0], [1], [0, 0, 1, 1], [], []>} : vector<16x16xf32>, vector<16x32xf32>, vector<16x32xf32> -> vector<16x32xf32>
    %c0_3 = arith.constant 0 : index
    %c0_4 = arith.constant 0 : index
    %8 = vector.load %arg2[%c0_3, %c0_4] : memref<16x32xf32, #tpu.memory_space<vmem>>, vector<16x32xf32>
    %9 = arith.addf %7, %8 : vector<16x32xf32>
    %c0_5 = arith.constant 0 : index
    %c0_6 = arith.constant 0 : index
    %c0_7 = arith.constant 0 : index
    %10 = vector.load %arg3[%c0_5, %c0_6, %c0_7] : memref<2x32x192xf32, #tpu.memory_space<vmem>>, vector<1x32x192xf32>
    %11 = vector.shape_cast %10 : vector<1x32x192xf32> to vector<32x192xf32>
    %c0_8 = arith.constant 0 : index
    %c0_9 = arith.constant 0 : index
    %c0_10 = arith.constant 0 : index
    %12 = vector.load %arg4[%c0_8, %c0_9, %c0_10] : memref<2x64x32xf32, #tpu.memory_space<vmem>>, vector<1x64x32xf32>
    %13 = vector.shape_cast %12 : vector<1x64x32xf32> to vector<64x32xf32>
    %c0_11 = arith.constant 0 : index
    %c0_12 = arith.constant 0 : index
    %c0_13 = arith.constant 0 : index
    %14 = vector.load %arg5[%c0_11, %c0_12, %c0_13] : memref<2x8x128xf32, #tpu.memory_space<vmem>>, vector<1x8x128xf32>
    %15 = vector.shape_cast %14 : vector<1x8x128xf32> to vector<8x128xf32>
    %16 = vector.extract_strided_slice %11 {offsets = [0, 0], sizes = [32, 96], strides = [1, 1]} : vector<32x192xf32> to vector<32x96xf32>
    %17 = vector.extract_strided_slice %11 {offsets = [0, 96], sizes = [32, 32], strides = [1, 1]} : vector<32x192xf32> to vector<32x32xf32>
    %18 = vector.extract_strided_slice %11 {offsets = [0, 128], sizes = [32, 64], strides = [1, 1]} : vector<32x192xf32> to vector<32x64xf32>
    %19 = vector.extract_strided_slice %15 {offsets = [0, 0], sizes = [1, 96], strides = [1, 1]} : vector<8x128xf32> to vector<1x96xf32>
    %20 = vector.extract_strided_slice %15 {offsets = [1, 0], sizes = [1, 32], strides = [1, 1]} : vector<8x128xf32> to vector<1x32xf32>
    %21 = vector.extract_strided_slice %15 {offsets = [2, 0], sizes = [1, 64], strides = [1, 1]} : vector<8x128xf32> to vector<1x64xf32>
    %22 = vector.extract_strided_slice %15 {offsets = [3, 0], sizes = [1, 32], strides = [1, 1]} : vector<8x128xf32> to vector<1x32xf32>
    %23 = vector.extract_strided_slice %15 {offsets = [4, 0], sizes = [1, 32], strides = [1, 1]} : vector<8x128xf32> to vector<1x32xf32>
    %24 = vector.extract_strided_slice %15 {offsets = [5, 0], sizes = [1, 32], strides = [1, 1]} : vector<8x128xf32> to vector<1x32xf32>
    %25 = vector.extract_strided_slice %15 {offsets = [6, 0], sizes = [1, 32], strides = [1, 1]} : vector<8x128xf32> to vector<1x32xf32>
    %26 = vector.extract_strided_slice %15 {offsets = [7, 0], sizes = [1, 32], strides = [1, 1]} : vector<8x128xf32> to vector<1x32xf32>
    %cst_14 = arith.constant dense<0.000000e+00> : vector<16x96xf32>
    %27 = tpu.matmul %9, %16, %cst_14 {dimension_numbers = #tpu.dot_dimension_numbers<[1], [0], [0], [1], [0, 0, 1, 1], [], []>} : vector<16x32xf32>, vector<32x96xf32>, vector<16x96xf32> -> vector<16x96xf32>
    %28 = vector.broadcast %19 : vector<1x96xf32> to vector<16x96xf32>
    %29 = arith.addf %27, %28 : vector<16x96xf32>
    %cst_15 = arith.constant 0.000000e+00 : f32
    %30 = vector.broadcast %cst_15 : f32 to vector<16x32xf32>
    %31 = vector.extract_strided_slice %29 {offsets = [0, 0], sizes = [16, 8], strides = [1, 1]} : vector<16x96xf32> to vector<16x8xf32>
    %32 = vector.shape_cast %31 : vector<16x8xf32> to vector<2x8x8xf32>
    %33 = vector.extract_strided_slice %29 {offsets = [0, 32], sizes = [16, 8], strides = [1, 1]} : vector<16x96xf32> to vector<16x8xf32>
    %34 = vector.shape_cast %33 : vector<16x8xf32> to vector<2x8x8xf32>
    %35 = vector.extract_strided_slice %29 {offsets = [0, 64], sizes = [16, 8], strides = [1, 1]} : vector<16x96xf32> to vector<16x8xf32>
    %36 = vector.shape_cast %35 : vector<16x8xf32> to vector<2x8x8xf32>
    "tpu.trace_start"() <{level = 10 : i32, message = "bqd,bkd->bqk"}> : () -> ()
    %cst_16 = arith.constant dense<0.000000e+00> : vector<2x8x8xf32>
    %37 = tpu.matmul %32, %34, %cst_16 {dimension_numbers = #tpu.dot_dimension_numbers<[2], [2], [1], [1], [0, 0, 0, 1, 1, 1], [0], [0]>} : vector<2x8x8xf32>, vector<2x8x8xf32>, vector<2x8x8xf32> -> vector<2x8x8xf32>
    "tpu.trace_stop"() : () -> ()
    %cst_17 = arith.constant dense<0xFF800000> : vector<2x8xf32>
    %38 = vector.multi_reduction <maximumf>, %37, %cst_17 [2] : vector<2x8x8xf32> to vector<2x8xf32>
    %39 = vector.shape_cast %38 : vector<2x8xf32> to vector<2x8x1xf32>
    %40 = vector.broadcast %39 : vector<2x8x1xf32> to vector<2x8x8xf32>
    %41 = arith.subf %37, %40 : vector<2x8x8xf32>
    %42 = math.exp %41 : vector<2x8x8xf32>
    %cst_18 = arith.constant dense<0.000000e+00> : vector<2x8xf32>
    %43 = vector.multi_reduction <add>, %42, %cst_18 [2] : vector<2x8x8xf32> to vector<2x8xf32>
    %44 = vector.shape_cast %43 : vector<2x8xf32> to vector<2x8x1xf32>
    %45 = tpu.reciprocal %44 {approx = true} : vector<2x8x1xf32> -> vector<2x8x1xf32>
    %46 = vector.broadcast %45 : vector<2x8x1xf32> to vector<2x8x8xf32>
    %47 = arith.mulf %42, %46 : vector<2x8x8xf32>
    "tpu.trace_start"() <{level = 10 : i32, message = "bqk,bkd->bqd"}> : () -> ()
    %cst_19 = arith.constant dense<0.000000e+00> : vector<2x8x8xf32>
    %48 = tpu.matmul %47, %36, %cst_19 {dimension_numbers = #tpu.dot_dimension_numbers<[2], [1], [1], [2], [0, 0, 0, 1, 1, 2], [0], [0]>} : vector<2x8x8xf32>, vector<2x8x8xf32>, vector<2x8x8xf32> -> vector<2x8x8xf32>
    "tpu.trace_stop"() : () -> ()
    %49 = vector.shape_cast %48 : vector<2x8x8xf32> to vector<16x8xf32>
    %50 = vector.extract_strided_slice %17 {offsets = [0, 0], sizes = [8, 32], strides = [1, 1]} : vector<32x32xf32> to vector<8x32xf32>
    %cst_20 = arith.constant dense<0.000000e+00> : vector<16x32xf32>
    %51 = tpu.matmul %49, %50, %cst_20 {dimension_numbers = #tpu.dot_dimension_numbers<[1], [0], [0], [1], [0, 0, 1, 1], [], []>} : vector<16x8xf32>, vector<8x32xf32>, vector<16x32xf32> -> vector<16x32xf32>
    %52 = arith.addf %30, %51 : vector<16x32xf32>
    %53 = vector.extract_strided_slice %29 {offsets = [0, 8], sizes = [16, 8], strides = [1, 1]} : vector<16x96xf32> to vector<16x8xf32>
    %54 = vector.shape_cast %53 : vector<16x8xf32> to vector<2x8x8xf32>
    %55 = vector.extract_strided_slice %29 {offsets = [0, 40], sizes = [16, 8], strides = [1, 1]} : vector<16x96xf32> to vector<16x8xf32>
    %56 = vector.shape_cast %55 : vector<16x8xf32> to vector<2x8x8xf32>
    %57 = vector.extract_strided_slice %29 {offsets = [0, 72], sizes = [16, 8], strides = [1, 1]} : vector<16x96xf32> to vector<16x8xf32>
    %58 = vector.shape_cast %57 : vector<16x8xf32> to vector<2x8x8xf32>
    "tpu.trace_start"() <{level = 10 : i32, message = "bqd,bkd->bqk"}> : () -> ()
    %cst_21 = arith.constant dense<0.000000e+00> : vector<2x8x8xf32>
    %59 = tpu.matmul %54, %56, %cst_21 {dimension_numbers = #tpu.dot_dimension_numbers<[2], [2], [1], [1], [0, 0, 0, 1, 1, 1], [0], [0]>} : vector<2x8x8xf32>, vector<2x8x8xf32>, vector<2x8x8xf32> -> vector<2x8x8xf32>
    "tpu.trace_stop"() : () -> ()
    %cst_22 = arith.constant dense<0xFF800000> : vector<2x8xf32>
    %60 = vector.multi_reduction <maximumf>, %59, %cst_22 [2] : vector<2x8x8xf32> to vector<2x8xf32>
    %61 = vector.shape_cast %60 : vector<2x8xf32> to vector<2x8x1xf32>
    %62 = vector.broadcast %61 : vector<2x8x1xf32> to vector<2x8x8xf32>
    %63 = arith.subf %59, %62 : vector<2x8x8xf32>
    %64 = math.exp %63 : vector<2x8x8xf32>
    %cst_23 = arith.constant dense<0.000000e+00> : vector<2x8xf32>
    %65 = vector.multi_reduction <add>, %64, %cst_23 [2] : vector<2x8x8xf32> to vector<2x8xf32>
    %66 = vector.shape_cast %65 : vector<2x8xf32> to vector<2x8x1xf32>
    %67 = tpu.reciprocal %66 {approx = true} : vector<2x8x1xf32> -> vector<2x8x1xf32>
    %68 = vector.broadcast %67 : vector<2x8x1xf32> to vector<2x8x8xf32>
    %69 = arith.mulf %64, %68 : vector<2x8x8xf32>
    "tpu.trace_start"() <{level = 10 : i32, message = "bqk,bkd->bqd"}> : () -> ()
    %cst_24 = arith.constant dense<0.000000e+00> : vector<2x8x8xf32>
    %70 = tpu.matmul %69, %58, %cst_24 {dimension_numbers = #tpu.dot_dimension_numbers<[2], [1], [1], [2], [0, 0, 0, 1, 1, 2], [0], [0]>} : vector<2x8x8xf32>, vector<2x8x8xf32>, vector<2x8x8xf32> -> vector<2x8x8xf32>
    "tpu.trace_stop"() : () -> ()
    %71 = vector.shape_cast %70 : vector<2x8x8xf32> to vector<16x8xf32>
    %72 = vector.extract_strided_slice %17 {offsets = [8, 0], sizes = [8, 32], strides = [1, 1]} : vector<32x32xf32> to vector<8x32xf32>
    %cst_25 = arith.constant dense<0.000000e+00> : vector<16x32xf32>
    %73 = tpu.matmul %71, %72, %cst_25 {dimension_numbers = #tpu.dot_dimension_numbers<[1], [0], [0], [1], [0, 0, 1, 1], [], []>} : vector<16x8xf32>, vector<8x32xf32>, vector<16x32xf32> -> vector<16x32xf32>
    %74 = arith.addf %52, %73 : vector<16x32xf32>
    %75 = vector.extract_strided_slice %29 {offsets = [0, 16], sizes = [16, 8], strides = [1, 1]} : vector<16x96xf32> to vector<16x8xf32>
    %76 = vector.shape_cast %75 : vector<16x8xf32> to vector<2x8x8xf32>
    %77 = vector.extract_strided_slice %29 {offsets = [0, 48], sizes = [16, 8], strides = [1, 1]} : vector<16x96xf32> to vector<16x8xf32>
    %78 = vector.shape_cast %77 : vector<16x8xf32> to vector<2x8x8xf32>
    %79 = vector.extract_strided_slice %29 {offsets = [0, 80], sizes = [16, 8], strides = [1, 1]} : vector<16x96xf32> to vector<16x8xf32>
    %80 = vector.shape_cast %79 : vector<16x8xf32> to vector<2x8x8xf32>
    "tpu.trace_start"() <{level = 10 : i32, message = "bqd,bkd->bqk"}> : () -> ()
    %cst_26 = arith.constant dense<0.000000e+00> : vector<2x8x8xf32>
    %81 = tpu.matmul %76, %78, %cst_26 {dimension_numbers = #tpu.dot_dimension_numbers<[2], [2], [1], [1], [0, 0, 0, 1, 1, 1], [0], [0]>} : vector<2x8x8xf32>, vector<2x8x8xf32>, vector<2x8x8xf32> -> vector<2x8x8xf32>
    "tpu.trace_stop"() : () -> ()
    %cst_27 = arith.constant dense<0xFF800000> : vector<2x8xf32>
    %82 = vector.multi_reduction <maximumf>, %81, %cst_27 [2] : vector<2x8x8xf32> to vector<2x8xf32>
    %83 = vector.shape_cast %82 : vector<2x8xf32> to vector<2x8x1xf32>
    %84 = vector.broadcast %83 : vector<2x8x1xf32> to vector<2x8x8xf32>
    %85 = arith.subf %81, %84 : vector<2x8x8xf32>
    %86 = math.exp %85 : vector<2x8x8xf32>
    %cst_28 = arith.constant dense<0.000000e+00> : vector<2x8xf32>
    %87 = vector.multi_reduction <add>, %86, %cst_28 [2] : vector<2x8x8xf32> to vector<2x8xf32>
    %88 = vector.shape_cast %87 : vector<2x8xf32> to vector<2x8x1xf32>
    %89 = tpu.reciprocal %88 {approx = true} : vector<2x8x1xf32> -> vector<2x8x1xf32>
    %90 = vector.broadcast %89 : vector<2x8x1xf32> to vector<2x8x8xf32>
    %91 = arith.mulf %86, %90 : vector<2x8x8xf32>
    "tpu.trace_start"() <{level = 10 : i32, message = "bqk,bkd->bqd"}> : () -> ()
    %cst_29 = arith.constant dense<0.000000e+00> : vector<2x8x8xf32>
    %92 = tpu.matmul %91, %80, %cst_29 {dimension_numbers = #tpu.dot_dimension_numbers<[2], [1], [1], [2], [0, 0, 0, 1, 1, 2], [0], [0]>} : vector<2x8x8xf32>, vector<2x8x8xf32>, vector<2x8x8xf32> -> vector<2x8x8xf32>
    "tpu.trace_stop"() : () -> ()
    %93 = vector.shape_cast %92 : vector<2x8x8xf32> to vector<16x8xf32>
    %94 = vector.extract_strided_slice %17 {offsets = [16, 0], sizes = [8, 32], strides = [1, 1]} : vector<32x32xf32> to vector<8x32xf32>
    %cst_30 = arith.constant dense<0.000000e+00> : vector<16x32xf32>
    %95 = tpu.matmul %93, %94, %cst_30 {dimension_numbers = #tpu.dot_dimension_numbers<[1], [0], [0], [1], [0, 0, 1, 1], [], []>} : vector<16x8xf32>, vector<8x32xf32>, vector<16x32xf32> -> vector<16x32xf32>
    %96 = arith.addf %74, %95 : vector<16x32xf32>
    %97 = vector.extract_strided_slice %29 {offsets = [0, 24], sizes = [16, 8], strides = [1, 1]} : vector<16x96xf32> to vector<16x8xf32>
    %98 = vector.shape_cast %97 : vector<16x8xf32> to vector<2x8x8xf32>
    %99 = vector.extract_strided_slice %29 {offsets = [0, 56], sizes = [16, 8], strides = [1, 1]} : vector<16x96xf32> to vector<16x8xf32>
    %100 = vector.shape_cast %99 : vector<16x8xf32> to vector<2x8x8xf32>
    %101 = vector.extract_strided_slice %29 {offsets = [0, 88], sizes = [16, 8], strides = [1, 1]} : vector<16x96xf32> to vector<16x8xf32>
    %102 = vector.shape_cast %101 : vector<16x8xf32> to vector<2x8x8xf32>
    "tpu.trace_start"() <{level = 10 : i32, message = "bqd,bkd->bqk"}> : () -> ()
    %cst_31 = arith.constant dense<0.000000e+00> : vector<2x8x8xf32>
    %103 = tpu.matmul %98, %100, %cst_31 {dimension_numbers = #tpu.dot_dimension_numbers<[2], [2], [1], [1], [0, 0, 0, 1, 1, 1], [0], [0]>} : vector<2x8x8xf32>, vector<2x8x8xf32>, vector<2x8x8xf32> -> vector<2x8x8xf32>
    "tpu.trace_stop"() : () -> ()
    %cst_32 = arith.constant dense<0xFF800000> : vector<2x8xf32>
    %104 = vector.multi_reduction <maximumf>, %103, %cst_32 [2] : vector<2x8x8xf32> to vector<2x8xf32>
    %105 = vector.shape_cast %104 : vector<2x8xf32> to vector<2x8x1xf32>
    %106 = vector.broadcast %105 : vector<2x8x1xf32> to vector<2x8x8xf32>
    %107 = arith.subf %103, %106 : vector<2x8x8xf32>
    %108 = math.exp %107 : vector<2x8x8xf32>
    %cst_33 = arith.constant dense<0.000000e+00> : vector<2x8xf32>
    %109 = vector.multi_reduction <add>, %108, %cst_33 [2] : vector<2x8x8xf32> to vector<2x8xf32>
    %110 = vector.shape_cast %109 : vector<2x8xf32> to vector<2x8x1xf32>
    %111 = tpu.reciprocal %110 {approx = true} : vector<2x8x1xf32> -> vector<2x8x1xf32>
    %112 = vector.broadcast %111 : vector<2x8x1xf32> to vector<2x8x8xf32>
    %113 = arith.mulf %108, %112 : vector<2x8x8xf32>
    "tpu.trace_start"() <{level = 10 : i32, message = "bqk,bkd->bqd"}> : () -> ()
    %cst_34 = arith.constant dense<0.000000e+00> : vector<2x8x8xf32>
    %114 = tpu.matmul %113, %102, %cst_34 {dimension_numbers = #tpu.dot_dimension_numbers<[2], [1], [1], [2], [0, 0, 0, 1, 1, 2], [0], [0]>} : vector<2x8x8xf32>, vector<2x8x8xf32>, vector<2x8x8xf32> -> vector<2x8x8xf32>
    "tpu.trace_stop"() : () -> ()
    %115 = vector.shape_cast %114 : vector<2x8x8xf32> to vector<16x8xf32>
    %116 = vector.extract_strided_slice %17 {offsets = [24, 0], sizes = [8, 32], strides = [1, 1]} : vector<32x32xf32> to vector<8x32xf32>
    %cst_35 = arith.constant dense<0.000000e+00> : vector<16x32xf32>
    %117 = tpu.matmul %115, %116, %cst_35 {dimension_numbers = #tpu.dot_dimension_numbers<[1], [0], [0], [1], [0, 0, 1, 1], [], []>} : vector<16x8xf32>, vector<8x32xf32>, vector<16x32xf32> -> vector<16x32xf32>
    %118 = arith.addf %96, %117 : vector<16x32xf32>
    %119 = vector.broadcast %20 : vector<1x32xf32> to vector<16x32xf32>
    %120 = arith.addf %118, %119 : vector<16x32xf32>
    %121 = arith.addf %9, %120 : vector<16x32xf32>
    %cst_36 = arith.constant dense<0.000000e+00> : vector<16xf32>
    %122 = vector.multi_reduction <add>, %121, %cst_36 [1] : vector<16x32xf32> to vector<16xf32>
    %123 = vector.shape_cast %122 : vector<16xf32> to vector<16x1xf32>
    %cst_37 = arith.constant 3.200000e+01 : f32
    %124 = vector.broadcast %cst_37 : f32 to vector<16x1xf32>
    %125 = arith.divf %123, %124 : vector<16x1xf32>
    %126 = vector.broadcast %125 : vector<16x1xf32> to vector<16x32xf32>
    %127 = arith.subf %121, %126 : vector<16x32xf32>
    %128 = arith.mulf %127, %127 : vector<16x32xf32>
    %cst_38 = arith.constant dense<0.000000e+00> : vector<16xf32>
    %129 = vector.multi_reduction <add>, %128, %cst_38 [1] : vector<16x32xf32> to vector<16xf32>
    %130 = vector.shape_cast %129 : vector<16xf32> to vector<16x1xf32>
    %cst_39 = arith.constant 3.200000e+01 : f32
    %131 = vector.broadcast %cst_39 : f32 to vector<16x1xf32>
    %132 = arith.divf %130, %131 : vector<16x1xf32>
    %133 = vector.broadcast %125 : vector<16x1xf32> to vector<16x32xf32>
    %134 = arith.subf %121, %133 : vector<16x32xf32>
    %cst_40 = arith.constant 9.99999974E-6 : f32
    %135 = vector.broadcast %cst_40 : f32 to vector<16x1xf32>
    %136 = arith.addf %132, %135 : vector<16x1xf32>
    %137 = math.rsqrt %136 : vector<16x1xf32>
    %138 = vector.broadcast %137 : vector<16x1xf32> to vector<16x32xf32>
    %139 = arith.mulf %134, %138 : vector<16x32xf32>
    %140 = vector.broadcast %23 : vector<1x32xf32> to vector<16x32xf32>
    %141 = arith.mulf %139, %140 : vector<16x32xf32>
    %142 = vector.broadcast %24 : vector<1x32xf32> to vector<16x32xf32>
    %143 = arith.addf %141, %142 : vector<16x32xf32>
    %cst_41 = arith.constant dense<0.000000e+00> : vector<16x64xf32>
    %144 = tpu.matmul %143, %18, %cst_41 {dimension_numbers = #tpu.dot_dimension_numbers<[1], [0], [0], [1], [0, 0, 1, 1], [], []>} : vector<16x32xf32>, vector<32x64xf32>, vector<16x64xf32> -> vector<16x64xf32>
    %145 = vector.broadcast %21 : vector<1x64xf32> to vector<16x64xf32>
    %146 = arith.addf %144, %145 : vector<16x64xf32>
    %cst_42 = arith.constant 0.000000e+00 : f32
    %147 = vector.broadcast %cst_42 : f32 to vector<16x64xf32>
    %148 = arith.maximumf %146, %147 : vector<16x64xf32>
    %cst_43 = arith.constant dense<0.000000e+00> : vector<16x32xf32>
    %149 = tpu.matmul %148, %13, %cst_43 {dimension_numbers = #tpu.dot_dimension_numbers<[1], [0], [0], [1], [0, 0, 1, 1], [], []>} : vector<16x64xf32>, vector<64x32xf32>, vector<16x32xf32> -> vector<16x32xf32>
    %150 = vector.broadcast %22 : vector<1x32xf32> to vector<16x32xf32>
    %151 = arith.addf %149, %150 : vector<16x32xf32>
    %152 = arith.addf %143, %151 : vector<16x32xf32>
    %cst_44 = arith.constant dense<0.000000e+00> : vector<16xf32>
    %153 = vector.multi_reduction <add>, %152, %cst_44 [1] : vector<16x32xf32> to vector<16xf32>
    %154 = vector.shape_cast %153 : vector<16xf32> to vector<16x1xf32>
    %cst_45 = arith.constant 3.200000e+01 : f32
    %155 = vector.broadcast %cst_45 : f32 to vector<16x1xf32>
    %156 = arith.divf %154, %155 : vector<16x1xf32>
    %157 = vector.broadcast %156 : vector<16x1xf32> to vector<16x32xf32>
    %158 = arith.subf %152, %157 : vector<16x32xf32>
    %159 = arith.mulf %158, %158 : vector<16x32xf32>
    %cst_46 = arith.constant dense<0.000000e+00> : vector<16xf32>
    %160 = vector.multi_reduction <add>, %159, %cst_46 [1] : vector<16x32xf32> to vector<16xf32>
    %161 = vector.shape_cast %160 : vector<16xf32> to vector<16x1xf32>
    %cst_47 = arith.constant 3.200000e+01 : f32
    %162 = vector.broadcast %cst_47 : f32 to vector<16x1xf32>
    %163 = arith.divf %161, %162 : vector<16x1xf32>
    %164 = vector.broadcast %156 : vector<16x1xf32> to vector<16x32xf32>
    %165 = arith.subf %152, %164 : vector<16x32xf32>
    %cst_48 = arith.constant 9.99999974E-6 : f32
    %166 = vector.broadcast %cst_48 : f32 to vector<16x1xf32>
    %167 = arith.addf %163, %166 : vector<16x1xf32>
    %168 = math.rsqrt %167 : vector<16x1xf32>
    %169 = vector.broadcast %168 : vector<16x1xf32> to vector<16x32xf32>
    %170 = arith.mulf %165, %169 : vector<16x32xf32>
    %171 = vector.broadcast %25 : vector<1x32xf32> to vector<16x32xf32>
    %172 = arith.mulf %170, %171 : vector<16x32xf32>
    %173 = vector.broadcast %26 : vector<1x32xf32> to vector<16x32xf32>
    %174 = arith.addf %172, %173 : vector<16x32xf32>
    %c1 = arith.constant 1 : index
    %c0_49 = arith.constant 0 : index
    %c0_50 = arith.constant 0 : index
    %175 = vector.load %arg3[%c1, %c0_49, %c0_50] : memref<2x32x192xf32, #tpu.memory_space<vmem>>, vector<1x32x192xf32>
    %176 = vector.shape_cast %175 : vector<1x32x192xf32> to vector<32x192xf32>
    %c1_51 = arith.constant 1 : index
    %c0_52 = arith.constant 0 : index
    %c0_53 = arith.constant 0 : index
    %177 = vector.load %arg4[%c1_51, %c0_52, %c0_53] : memref<2x64x32xf32, #tpu.memory_space<vmem>>, vector<1x64x32xf32>
    %178 = vector.shape_cast %177 : vector<1x64x32xf32> to vector<64x32xf32>
    %c1_54 = arith.constant 1 : index
    %c0_55 = arith.constant 0 : index
    %c0_56 = arith.constant 0 : index
    %179 = vector.load %arg5[%c1_54, %c0_55, %c0_56] : memref<2x8x128xf32, #tpu.memory_space<vmem>>, vector<1x8x128xf32>
    %180 = vector.shape_cast %179 : vector<1x8x128xf32> to vector<8x128xf32>
    %181 = vector.extract_strided_slice %176 {offsets = [0, 0], sizes = [32, 96], strides = [1, 1]} : vector<32x192xf32> to vector<32x96xf32>
    %182 = vector.extract_strided_slice %176 {offsets = [0, 96], sizes = [32, 32], strides = [1, 1]} : vector<32x192xf32> to vector<32x32xf32>
    %183 = vector.extract_strided_slice %176 {offsets = [0, 128], sizes = [32, 64], strides = [1, 1]} : vector<32x192xf32> to vector<32x64xf32>
    %184 = vector.extract_strided_slice %180 {offsets = [0, 0], sizes = [1, 96], strides = [1, 1]} : vector<8x128xf32> to vector<1x96xf32>
    %185 = vector.extract_strided_slice %180 {offsets = [1, 0], sizes = [1, 32], strides = [1, 1]} : vector<8x128xf32> to vector<1x32xf32>
    %186 = vector.extract_strided_slice %180 {offsets = [2, 0], sizes = [1, 64], strides = [1, 1]} : vector<8x128xf32> to vector<1x64xf32>
    %187 = vector.extract_strided_slice %180 {offsets = [3, 0], sizes = [1, 32], strides = [1, 1]} : vector<8x128xf32> to vector<1x32xf32>
    %188 = vector.extract_strided_slice %180 {offsets = [4, 0], sizes = [1, 32], strides = [1, 1]} : vector<8x128xf32> to vector<1x32xf32>
    %189 = vector.extract_strided_slice %180 {offsets = [5, 0], sizes = [1, 32], strides = [1, 1]} : vector<8x128xf32> to vector<1x32xf32>
    %190 = vector.extract_strided_slice %180 {offsets = [6, 0], sizes = [1, 32], strides = [1, 1]} : vector<8x128xf32> to vector<1x32xf32>
    %191 = vector.extract_strided_slice %180 {offsets = [7, 0], sizes = [1, 32], strides = [1, 1]} : vector<8x128xf32> to vector<1x32xf32>
    %cst_57 = arith.constant dense<0.000000e+00> : vector<16x96xf32>
    %192 = tpu.matmul %174, %181, %cst_57 {dimension_numbers = #tpu.dot_dimension_numbers<[1], [0], [0], [1], [0, 0, 1, 1], [], []>} : vector<16x32xf32>, vector<32x96xf32>, vector<16x96xf32> -> vector<16x96xf32>
    %193 = vector.broadcast %184 : vector<1x96xf32> to vector<16x96xf32>
    %194 = arith.addf %192, %193 : vector<16x96xf32>
    %cst_58 = arith.constant 0.000000e+00 : f32
    %195 = vector.broadcast %cst_58 : f32 to vector<16x32xf32>
    %196 = vector.extract_strided_slice %194 {offsets = [0, 0], sizes = [16, 8], strides = [1, 1]} : vector<16x96xf32> to vector<16x8xf32>
    %197 = vector.shape_cast %196 : vector<16x8xf32> to vector<2x8x8xf32>
    %198 = vector.extract_strided_slice %194 {offsets = [0, 32], sizes = [16, 8], strides = [1, 1]} : vector<16x96xf32> to vector<16x8xf32>
    %199 = vector.shape_cast %198 : vector<16x8xf32> to vector<2x8x8xf32>
    %200 = vector.extract_strided_slice %194 {offsets = [0, 64], sizes = [16, 8], strides = [1, 1]} : vector<16x96xf32> to vector<16x8xf32>
    %201 = vector.shape_cast %200 : vector<16x8xf32> to vector<2x8x8xf32>
    "tpu.trace_start"() <{level = 10 : i32, message = "bqd,bkd->bqk"}> : () -> ()
    %cst_59 = arith.constant dense<0.000000e+00> : vector<2x8x8xf32>
    %202 = tpu.matmul %197, %199, %cst_59 {dimension_numbers = #tpu.dot_dimension_numbers<[2], [2], [1], [1], [0, 0, 0, 1, 1, 1], [0], [0]>} : vector<2x8x8xf32>, vector<2x8x8xf32>, vector<2x8x8xf32> -> vector<2x8x8xf32>
    "tpu.trace_stop"() : () -> ()
    %cst_60 = arith.constant dense<0xFF800000> : vector<2x8xf32>
    %203 = vector.multi_reduction <maximumf>, %202, %cst_60 [2] : vector<2x8x8xf32> to vector<2x8xf32>
    %204 = vector.shape_cast %203 : vector<2x8xf32> to vector<2x8x1xf32>
    %205 = vector.broadcast %204 : vector<2x8x1xf32> to vector<2x8x8xf32>
    %206 = arith.subf %202, %205 : vector<2x8x8xf32>
    %207 = math.exp %206 : vector<2x8x8xf32>
    %cst_61 = arith.constant dense<0.000000e+00> : vector<2x8xf32>
    %208 = vector.multi_reduction <add>, %207, %cst_61 [2] : vector<2x8x8xf32> to vector<2x8xf32>
    %209 = vector.shape_cast %208 : vector<2x8xf32> to vector<2x8x1xf32>
    %210 = tpu.reciprocal %209 {approx = true} : vector<2x8x1xf32> -> vector<2x8x1xf32>
    %211 = vector.broadcast %210 : vector<2x8x1xf32> to vector<2x8x8xf32>
    %212 = arith.mulf %207, %211 : vector<2x8x8xf32>
    "tpu.trace_start"() <{level = 10 : i32, message = "bqk,bkd->bqd"}> : () -> ()
    %cst_62 = arith.constant dense<0.000000e+00> : vector<2x8x8xf32>
    %213 = tpu.matmul %212, %201, %cst_62 {dimension_numbers = #tpu.dot_dimension_numbers<[2], [1], [1], [2], [0, 0, 0, 1, 1, 2], [0], [0]>} : vector<2x8x8xf32>, vector<2x8x8xf32>, vector<2x8x8xf32> -> vector<2x8x8xf32>
    "tpu.trace_stop"() : () -> ()
    %214 = vector.shape_cast %213 : vector<2x8x8xf32> to vector<16x8xf32>
    %215 = vector.extract_strided_slice %182 {offsets = [0, 0], sizes = [8, 32], strides = [1, 1]} : vector<32x32xf32> to vector<8x32xf32>
    %cst_63 = arith.constant dense<0.000000e+00> : vector<16x32xf32>
    %216 = tpu.matmul %214, %215, %cst_63 {dimension_numbers = #tpu.dot_dimension_numbers<[1], [0], [0], [1], [0, 0, 1, 1], [], []>} : vector<16x8xf32>, vector<8x32xf32>, vector<16x32xf32> -> vector<16x32xf32>
    %217 = arith.addf %195, %216 : vector<16x32xf32>
    %218 = vector.extract_strided_slice %194 {offsets = [0, 8], sizes = [16, 8], strides = [1, 1]} : vector<16x96xf32> to vector<16x8xf32>
    %219 = vector.shape_cast %218 : vector<16x8xf32> to vector<2x8x8xf32>
    %220 = vector.extract_strided_slice %194 {offsets = [0, 40], sizes = [16, 8], strides = [1, 1]} : vector<16x96xf32> to vector<16x8xf32>
    %221 = vector.shape_cast %220 : vector<16x8xf32> to vector<2x8x8xf32>
    %222 = vector.extract_strided_slice %194 {offsets = [0, 72], sizes = [16, 8], strides = [1, 1]} : vector<16x96xf32> to vector<16x8xf32>
    %223 = vector.shape_cast %222 : vector<16x8xf32> to vector<2x8x8xf32>
    "tpu.trace_start"() <{level = 10 : i32, message = "bqd,bkd->bqk"}> : () -> ()
    %cst_64 = arith.constant dense<0.000000e+00> : vector<2x8x8xf32>
    %224 = tpu.matmul %219, %221, %cst_64 {dimension_numbers = #tpu.dot_dimension_numbers<[2], [2], [1], [1], [0, 0, 0, 1, 1, 1], [0], [0]>} : vector<2x8x8xf32>, vector<2x8x8xf32>, vector<2x8x8xf32> -> vector<2x8x8xf32>
    "tpu.trace_stop"() : () -> ()
    %cst_65 = arith.constant dense<0xFF800000> : vector<2x8xf32>
    %225 = vector.multi_reduction <maximumf>, %224, %cst_65 [2] : vector<2x8x8xf32> to vector<2x8xf32>
    %226 = vector.shape_cast %225 : vector<2x8xf32> to vector<2x8x1xf32>
    %227 = vector.broadcast %226 : vector<2x8x1xf32> to vector<2x8x8xf32>
    %228 = arith.subf %224, %227 : vector<2x8x8xf32>
    %229 = math.exp %228 : vector<2x8x8xf32>
    %cst_66 = arith.constant dense<0.000000e+00> : vector<2x8xf32>
    %230 = vector.multi_reduction <add>, %229, %cst_66 [2] : vector<2x8x8xf32> to vector<2x8xf32>
    %231 = vector.shape_cast %230 : vector<2x8xf32> to vector<2x8x1xf32>
    %232 = tpu.reciprocal %231 {approx = true} : vector<2x8x1xf32> -> vector<2x8x1xf32>
    %233 = vector.broadcast %232 : vector<2x8x1xf32> to vector<2x8x8xf32>
    %234 = arith.mulf %229, %233 : vector<2x8x8xf32>
    "tpu.trace_start"() <{level = 10 : i32, message = "bqk,bkd->bqd"}> : () -> ()
    %cst_67 = arith.constant dense<0.000000e+00> : vector<2x8x8xf32>
    %235 = tpu.matmul %234, %223, %cst_67 {dimension_numbers = #tpu.dot_dimension_numbers<[2], [1], [1], [2], [0, 0, 0, 1, 1, 2], [0], [0]>} : vector<2x8x8xf32>, vector<2x8x8xf32>, vector<2x8x8xf32> -> vector<2x8x8xf32>
    "tpu.trace_stop"() : () -> ()
    %236 = vector.shape_cast %235 : vector<2x8x8xf32> to vector<16x8xf32>
    %237 = vector.extract_strided_slice %182 {offsets = [8, 0], sizes = [8, 32], strides = [1, 1]} : vector<32x32xf32> to vector<8x32xf32>
    %cst_68 = arith.constant dense<0.000000e+00> : vector<16x32xf32>
    %238 = tpu.matmul %236, %237, %cst_68 {dimension_numbers = #tpu.dot_dimension_numbers<[1], [0], [0], [1], [0, 0, 1, 1], [], []>} : vector<16x8xf32>, vector<8x32xf32>, vector<16x32xf32> -> vector<16x32xf32>
    %239 = arith.addf %217, %238 : vector<16x32xf32>
    %240 = vector.extract_strided_slice %194 {offsets = [0, 16], sizes = [16, 8], strides = [1, 1]} : vector<16x96xf32> to vector<16x8xf32>
    %241 = vector.shape_cast %240 : vector<16x8xf32> to vector<2x8x8xf32>
    %242 = vector.extract_strided_slice %194 {offsets = [0, 48], sizes = [16, 8], strides = [1, 1]} : vector<16x96xf32> to vector<16x8xf32>
    %243 = vector.shape_cast %242 : vector<16x8xf32> to vector<2x8x8xf32>
    %244 = vector.extract_strided_slice %194 {offsets = [0, 80], sizes = [16, 8], strides = [1, 1]} : vector<16x96xf32> to vector<16x8xf32>
    %245 = vector.shape_cast %244 : vector<16x8xf32> to vector<2x8x8xf32>
    "tpu.trace_start"() <{level = 10 : i32, message = "bqd,bkd->bqk"}> : () -> ()
    %cst_69 = arith.constant dense<0.000000e+00> : vector<2x8x8xf32>
    %246 = tpu.matmul %241, %243, %cst_69 {dimension_numbers = #tpu.dot_dimension_numbers<[2], [2], [1], [1], [0, 0, 0, 1, 1, 1], [0], [0]>} : vector<2x8x8xf32>, vector<2x8x8xf32>, vector<2x8x8xf32> -> vector<2x8x8xf32>
    "tpu.trace_stop"() : () -> ()
    %cst_70 = arith.constant dense<0xFF800000> : vector<2x8xf32>
    %247 = vector.multi_reduction <maximumf>, %246, %cst_70 [2] : vector<2x8x8xf32> to vector<2x8xf32>
    %248 = vector.shape_cast %247 : vector<2x8xf32> to vector<2x8x1xf32>
    %249 = vector.broadcast %248 : vector<2x8x1xf32> to vector<2x8x8xf32>
    %250 = arith.subf %246, %249 : vector<2x8x8xf32>
    %251 = math.exp %250 : vector<2x8x8xf32>
    %cst_71 = arith.constant dense<0.000000e+00> : vector<2x8xf32>
    %252 = vector.multi_reduction <add>, %251, %cst_71 [2] : vector<2x8x8xf32> to vector<2x8xf32>
    %253 = vector.shape_cast %252 : vector<2x8xf32> to vector<2x8x1xf32>
    %254 = tpu.reciprocal %253 {approx = true} : vector<2x8x1xf32> -> vector<2x8x1xf32>
    %255 = vector.broadcast %254 : vector<2x8x1xf32> to vector<2x8x8xf32>
    %256 = arith.mulf %251, %255 : vector<2x8x8xf32>
    "tpu.trace_start"() <{level = 10 : i32, message = "bqk,bkd->bqd"}> : () -> ()
    %cst_72 = arith.constant dense<0.000000e+00> : vector<2x8x8xf32>
    %257 = tpu.matmul %256, %245, %cst_72 {dimension_numbers = #tpu.dot_dimension_numbers<[2], [1], [1], [2], [0, 0, 0, 1, 1, 2], [0], [0]>} : vector<2x8x8xf32>, vector<2x8x8xf32>, vector<2x8x8xf32> -> vector<2x8x8xf32>
    "tpu.trace_stop"() : () -> ()
    %258 = vector.shape_cast %257 : vector<2x8x8xf32> to vector<16x8xf32>
    %259 = vector.extract_strided_slice %182 {offsets = [16, 0], sizes = [8, 32], strides = [1, 1]} : vector<32x32xf32> to vector<8x32xf32>
    %cst_73 = arith.constant dense<0.000000e+00> : vector<16x32xf32>
    %260 = tpu.matmul %258, %259, %cst_73 {dimension_numbers = #tpu.dot_dimension_numbers<[1], [0], [0], [1], [0, 0, 1, 1], [], []>} : vector<16x8xf32>, vector<8x32xf32>, vector<16x32xf32> -> vector<16x32xf32>
    %261 = arith.addf %239, %260 : vector<16x32xf32>
    %262 = vector.extract_strided_slice %194 {offsets = [0, 24], sizes = [16, 8], strides = [1, 1]} : vector<16x96xf32> to vector<16x8xf32>
    %263 = vector.shape_cast %262 : vector<16x8xf32> to vector<2x8x8xf32>
    %264 = vector.extract_strided_slice %194 {offsets = [0, 56], sizes = [16, 8], strides = [1, 1]} : vector<16x96xf32> to vector<16x8xf32>
    %265 = vector.shape_cast %264 : vector<16x8xf32> to vector<2x8x8xf32>
    %266 = vector.extract_strided_slice %194 {offsets = [0, 88], sizes = [16, 8], strides = [1, 1]} : vector<16x96xf32> to vector<16x8xf32>
    %267 = vector.shape_cast %266 : vector<16x8xf32> to vector<2x8x8xf32>
    "tpu.trace_start"() <{level = 10 : i32, message = "bqd,bkd->bqk"}> : () -> ()
    %cst_74 = arith.constant dense<0.000000e+00> : vector<2x8x8xf32>
    %268 = tpu.matmul %263, %265, %cst_74 {dimension_numbers = #tpu.dot_dimension_numbers<[2], [2], [1], [1], [0, 0, 0, 1, 1, 1], [0], [0]>} : vector<2x8x8xf32>, vector<2x8x8xf32>, vector<2x8x8xf32> -> vector<2x8x8xf32>
    "tpu.trace_stop"() : () -> ()
    %cst_75 = arith.constant dense<0xFF800000> : vector<2x8xf32>
    %269 = vector.multi_reduction <maximumf>, %268, %cst_75 [2] : vector<2x8x8xf32> to vector<2x8xf32>
    %270 = vector.shape_cast %269 : vector<2x8xf32> to vector<2x8x1xf32>
    %271 = vector.broadcast %270 : vector<2x8x1xf32> to vector<2x8x8xf32>
    %272 = arith.subf %268, %271 : vector<2x8x8xf32>
    %273 = math.exp %272 : vector<2x8x8xf32>
    %cst_76 = arith.constant dense<0.000000e+00> : vector<2x8xf32>
    %274 = vector.multi_reduction <add>, %273, %cst_76 [2] : vector<2x8x8xf32> to vector<2x8xf32>
    %275 = vector.shape_cast %274 : vector<2x8xf32> to vector<2x8x1xf32>
    %276 = tpu.reciprocal %275 {approx = true} : vector<2x8x1xf32> -> vector<2x8x1xf32>
    %277 = vector.broadcast %276 : vector<2x8x1xf32> to vector<2x8x8xf32>
    %278 = arith.mulf %273, %277 : vector<2x8x8xf32>
    "tpu.trace_start"() <{level = 10 : i32, message = "bqk,bkd->bqd"}> : () -> ()
    %cst_77 = arith.constant dense<0.000000e+00> : vector<2x8x8xf32>
    %279 = tpu.matmul %278, %267, %cst_77 {dimension_numbers = #tpu.dot_dimension_numbers<[2], [1], [1], [2], [0, 0, 0, 1, 1, 2], [0], [0]>} : vector<2x8x8xf32>, vector<2x8x8xf32>, vector<2x8x8xf32> -> vector<2x8x8xf32>
    "tpu.trace_stop"() : () -> ()
    %280 = vector.shape_cast %279 : vector<2x8x8xf32> to vector<16x8xf32>
    %281 = vector.extract_strided_slice %182 {offsets = [24, 0], sizes = [8, 32], strides = [1, 1]} : vector<32x32xf32> to vector<8x32xf32>
    %cst_78 = arith.constant dense<0.000000e+00> : vector<16x32xf32>
    %282 = tpu.matmul %280, %281, %cst_78 {dimension_numbers = #tpu.dot_dimension_numbers<[1], [0], [0], [1], [0, 0, 1, 1], [], []>} : vector<16x8xf32>, vector<8x32xf32>, vector<16x32xf32> -> vector<16x32xf32>
    %283 = arith.addf %261, %282 : vector<16x32xf32>
    %284 = vector.broadcast %185 : vector<1x32xf32> to vector<16x32xf32>
    %285 = arith.addf %283, %284 : vector<16x32xf32>
    %286 = arith.addf %174, %285 : vector<16x32xf32>
    %cst_79 = arith.constant dense<0.000000e+00> : vector<16xf32>
    %287 = vector.multi_reduction <add>, %286, %cst_79 [1] : vector<16x32xf32> to vector<16xf32>
    %288 = vector.shape_cast %287 : vector<16xf32> to vector<16x1xf32>
    %cst_80 = arith.constant 3.200000e+01 : f32
    %289 = vector.broadcast %cst_80 : f32 to vector<16x1xf32>
    %290 = arith.divf %288, %289 : vector<16x1xf32>
    %291 = vector.broadcast %290 : vector<16x1xf32> to vector<16x32xf32>
    %292 = arith.subf %286, %291 : vector<16x32xf32>
    %293 = arith.mulf %292, %292 : vector<16x32xf32>
    %cst_81 = arith.constant dense<0.000000e+00> : vector<16xf32>
    %294 = vector.multi_reduction <add>, %293, %cst_81 [1] : vector<16x32xf32> to vector<16xf32>
    %295 = vector.shape_cast %294 : vector<16xf32> to vector<16x1xf32>
    %cst_82 = arith.constant 3.200000e+01 : f32
    %296 = vector.broadcast %cst_82 : f32 to vector<16x1xf32>
    %297 = arith.divf %295, %296 : vector<16x1xf32>
    %298 = vector.broadcast %290 : vector<16x1xf32> to vector<16x32xf32>
    %299 = arith.subf %286, %298 : vector<16x32xf32>
    %cst_83 = arith.constant 9.99999974E-6 : f32
    %300 = vector.broadcast %cst_83 : f32 to vector<16x1xf32>
    %301 = arith.addf %297, %300 : vector<16x1xf32>
    %302 = math.rsqrt %301 : vector<16x1xf32>
    %303 = vector.broadcast %302 : vector<16x1xf32> to vector<16x32xf32>
    %304 = arith.mulf %299, %303 : vector<16x32xf32>
    %305 = vector.broadcast %188 : vector<1x32xf32> to vector<16x32xf32>
    %306 = arith.mulf %304, %305 : vector<16x32xf32>
    %307 = vector.broadcast %189 : vector<1x32xf32> to vector<16x32xf32>
    %308 = arith.addf %306, %307 : vector<16x32xf32>
    %cst_84 = arith.constant dense<0.000000e+00> : vector<16x64xf32>
    %309 = tpu.matmul %308, %183, %cst_84 {dimension_numbers = #tpu.dot_dimension_numbers<[1], [0], [0], [1], [0, 0, 1, 1], [], []>} : vector<16x32xf32>, vector<32x64xf32>, vector<16x64xf32> -> vector<16x64xf32>
    %310 = vector.broadcast %186 : vector<1x64xf32> to vector<16x64xf32>
    %311 = arith.addf %309, %310 : vector<16x64xf32>
    %cst_85 = arith.constant 0.000000e+00 : f32
    %312 = vector.broadcast %cst_85 : f32 to vector<16x64xf32>
    %313 = arith.maximumf %311, %312 : vector<16x64xf32>
    %cst_86 = arith.constant dense<0.000000e+00> : vector<16x32xf32>
    %314 = tpu.matmul %313, %178, %cst_86 {dimension_numbers = #tpu.dot_dimension_numbers<[1], [0], [0], [1], [0, 0, 1, 1], [], []>} : vector<16x64xf32>, vector<64x32xf32>, vector<16x32xf32> -> vector<16x32xf32>
    %315 = vector.broadcast %187 : vector<1x32xf32> to vector<16x32xf32>
    %316 = arith.addf %314, %315 : vector<16x32xf32>
    %317 = arith.addf %308, %316 : vector<16x32xf32>
    %cst_87 = arith.constant dense<0.000000e+00> : vector<16xf32>
    %318 = vector.multi_reduction <add>, %317, %cst_87 [1] : vector<16x32xf32> to vector<16xf32>
    %319 = vector.shape_cast %318 : vector<16xf32> to vector<16x1xf32>
    %cst_88 = arith.constant 3.200000e+01 : f32
    %320 = vector.broadcast %cst_88 : f32 to vector<16x1xf32>
    %321 = arith.divf %319, %320 : vector<16x1xf32>
    %322 = vector.broadcast %321 : vector<16x1xf32> to vector<16x32xf32>
    %323 = arith.subf %317, %322 : vector<16x32xf32>
    %324 = arith.mulf %323, %323 : vector<16x32xf32>
    %cst_89 = arith.constant dense<0.000000e+00> : vector<16xf32>
    %325 = vector.multi_reduction <add>, %324, %cst_89 [1] : vector<16x32xf32> to vector<16xf32>
    %326 = vector.shape_cast %325 : vector<16xf32> to vector<16x1xf32>
    %cst_90 = arith.constant 3.200000e+01 : f32
    %327 = vector.broadcast %cst_90 : f32 to vector<16x1xf32>
    %328 = arith.divf %326, %327 : vector<16x1xf32>
    %329 = vector.broadcast %321 : vector<16x1xf32> to vector<16x32xf32>
    %330 = arith.subf %317, %329 : vector<16x32xf32>
    %cst_91 = arith.constant 9.99999974E-6 : f32
    %331 = vector.broadcast %cst_91 : f32 to vector<16x1xf32>
    %332 = arith.addf %328, %331 : vector<16x1xf32>
    %333 = math.rsqrt %332 : vector<16x1xf32>
    %334 = vector.broadcast %333 : vector<16x1xf32> to vector<16x32xf32>
    %335 = arith.mulf %330, %334 : vector<16x32xf32>
    %336 = vector.broadcast %190 : vector<1x32xf32> to vector<16x32xf32>
    %337 = arith.mulf %335, %336 : vector<16x32xf32>
    %338 = vector.broadcast %191 : vector<1x32xf32> to vector<16x32xf32>
    %339 = arith.addf %337, %338 : vector<16x32xf32>
    %c0_92 = arith.constant 0 : index
    %c0_93 = arith.constant 0 : index
    %340 = vector.load %arg6[%c0_92, %c0_93] : memref<32x128xf32, #tpu.memory_space<vmem>>, vector<32x128xf32>
    %cst_94 = arith.constant dense<0.000000e+00> : vector<16x128xf32>
    %341 = tpu.matmul %339, %340, %cst_94 {dimension_numbers = #tpu.dot_dimension_numbers<[1], [0], [0], [1], [0, 0, 1, 1], [], []>} : vector<16x32xf32>, vector<32x128xf32>, vector<16x128xf32> -> vector<16x128xf32>
    %c0_95 = arith.constant 0 : index
    %c0_96 = arith.constant 0 : index
    %342 = vector.load %arg7[%c0_95, %c0_96] : memref<1x128xf32, #tpu.memory_space<vmem>>, vector<1x128xf32>
    %343 = vector.broadcast %342 : vector<1x128xf32> to vector<16x128xf32>
    %344 = arith.addf %341, %343 : vector<16x128xf32>
    %c0_97 = arith.constant 0 : index
    %c0_98 = arith.constant 0 : index
    %345 = vector.load %arg8[%c0_97, %c0_98] : memref<16x128xf32, #tpu.memory_space<vmem>>, vector<16x128xf32>
    tpu.vector_store %arg8[%c0_97, %c0_98], %344 {strides = array<i32>} : memref<16x128xf32, #tpu.memory_space<vmem>>, vector<16x128xf32>,
    return
  }
}

</mosaic_0001>

<bundles_post_ra>
// kernel: small_encoder_decoder_forward.1
= control target key start
LH: loop header
LB: loop body
LE: loop exit
PB: predicated region body
PF: predicated region fallthrough
CT: control target
= control target key end

     0   :  { %v4918_v0 = vmov 0   ;;  %v4919_v6 = vmov 0.0   ;;  %v31_v7 = vlaneseq  ;;  %vm49_vm0 = vcmask 130048   ;;  %s4921_s24 = smov 96   ;;  %s4922_s25 = smov 64   ;;  %s5587_s0 = inlined_call_operand.vmem [shape: s32[16,1], index: 0, kind: input, shape index: {}]   ;;  %s5588_s1 = inlined_call_operand.vmem [shape: f32[16,32], index: 1, kind: input, shape index: {}]   ;;  %s5589_s3 = inlined_call_operand.vmem [shape: f32[2,32,192], index: 3, kind: input, shape index: {}]   ;;  %s5590_s2 = inlined_call_operand.vmem [shape: f32[16,32], index: 2, kind: input, shape index: {}]   ;;  %s5591_s5 = inlined_call_operand.vmem [shape: f32[2,8,128], index: 5, kind: input, shape index: {}]   ;;  %s5592_s4 = inlined_call_operand.vmem [shape: f32[2,64,32], index: 4, kind: input, shape index: {}]   ;;  %s5593_s6 = inlined_call_operand.vmem [shape: f32[32,128], index: 6, kind: input, shape index: {}]   ;;  %s5594_s7 = inlined_call_operand.vmem [shape: f32[1,128], index: 7, kind: input, shape index: {}]   ;;  %s5595_s8 = inlined_call_operand.vmem [shape: f32[16,128], index: 8, kind: output, shape index: {}]  }
   0x1   :  { %4837 = vset.pattern.permute.xlu0 %v4918_v0  ;;  %v29_v1 = vld [vmem:[%s5587_s0] sm:$0xff]  ;;  %v46_v2 = vld [vmem:[%s5588_s1 + $0x8] sm:$0xff]  ;;  %v4993_v5 = vld [vmem:[%s5589_s3 + $0x30] sm:$0xff]  ;;  %vm152_vm3 = vcmask 261120   ;;  %vm4920_vm4 = vmmov 0   ;;  %vm237_vm5 = vcmask 64512  }
   0x2   :  { %34 = vperm.xlu0 %4837, %v29_v1   ;;  %4522 = vmatprep.subr.mxu0 %v46_v2  ;;  %v45_v3 = vld [vmem:[%s5588_s1] sm:$0xff]  ;;  %v30_v4 = vld [vmem:[%s5587_s0 + $0x8] sm:$0xff]  ;;  %v32_v8 = vand.u32 127, %v31_v7  ;;  %v5010_v14 = vld [vmem:[%s5589_s3 + $0x10] sm:$0xff]  ;;  %v5036_v22 = vshrl.u32 %v31_v7, 7  ;;  %s4923_s26 = smov 88  }
   0x3   :  { %4523 = vmatpush3.msra.mxu0 %v46_v2  ;;  %4529 = vmatprep.subr.mxu1 %v4993_v5  ;;  %v5003_v13 = vld [vmem:[%s5589_s3 + $0x20] sm:$0xff]  ;;  %v48_v18 = vld [vmem:[%s5590_s2 + $0x8] sm:$0xff]  ;;  %s4924_s27 = smov 120   ;;  %s4925_s28 = smov 56   ;;  %vm2035_vm6 = vcmask 523264  }
   0x4   :  { %4524 = vmatprep.subr.mxu0 %v45_v3  ;;  %4530 = vmatpush3.msra.mxu1 %v4993_v5  ;;  %v5017_v15 = vld [vmem:[%s5589_s3] sm:$0xff]  ;;  %v150_v23 = vsub.s32 0, %v5036_v22  ;;  %s4926_s29 = smov 32   ;;  %s4927_s30 = smov 80  }
   0x5   :  { %4525 = vmatpush3.msra.mxu0 %v45_v3  ;;  %4531 = vmatprep.subr.mxu1 %v5003_v13  ;;  %v47_v17 = vld [vmem:[%s5590_s2] sm:$0xff]  ;;  %s4928_s9 = smov 112   ;;  %s4929_s10 = smov 48  }
   0x6   :  { %37 = vperm.xlu0 %4837, %v30_v4   ;;  %4540 = vmatprep.subr.mxu0 %v4919_v6  ;;  %v5046_v24 = vld [vmem:[%s5591_s5] sm:$0xff]  ;;  %s4930_s11 = smov 72   ;;  %s4931_s12 = smov 104  }
   0x7   :  { %4532 = vmatpush3.msra.mxu1 %v5003_v13  ;;  %v151_v26 = vrot.slane %v5046_v24, %v150_v23  ;;  %s4932_s13 = smov 40  }
   0x8   :  { %4533 = vmatprep.subr.mxu1 %v5010_v14 }
   0x9   :  { %4534 = vmatpush3.msra.mxu1 %v5010_v14 }
   0xa   :  { %4535 = vmatprep.subr.mxu1 %v5017_v15 }
   0xb   :  { %4536 = vmatpush3.msra.mxu1 %v5017_v15 }
   0xc   :  { %4550 = vmatprep.subr.mxu1 %v4919_v6 }
  0x7d   :  { %v35_v9 = vpop.permute.xlu0 %34 }
  0x7e   :  { %vm39_vm1 = vcmp.eq.s32.totalorder %v35_v9, %v32_v8 }
  0x7f   :  { %v4280_v10 = vsel %vm39_vm1, 1.0, %v4919_v6 }
  0x80   :  { %4526 = vmatprep.mubr.msk.f32.mxu0 %vm49_vm0, %v4280_v10 }
  0x81   :  { %v38_v11 = vpop.permute.xlu0 %37 }
  0x82   :  { %vm40_vm2 = vcmp.eq.s32.totalorder %v38_v11, %v32_v8 }
  0x83   :  { %v4281_v12 = vsel %vm40_vm2, 1.0, %v4919_v6 }
  0x84   :  { %4527 = vmatmul.mubr.msk.f32.vlgmr.msra.gmra.mxu0 %vm49_vm0, %v4281_v12 }
  0x85   :  { %4542 = vmatprep.mubr.msk.f32.mxu0 %vm4920_vm4, %v4919_v6 }
 0x144   :  { %v4528_v16 = vpop.f32.mrf.mxu0 }
 0x145   :  { %v5030_v21 = vadd.f32 %v4528_v16, %v48_v18 }
 0x146   :  { %v122_v19 = vpop.f32.mrf.mxu0 }
 0x147   :  { %v5028_v20 = vadd.f32 %v122_v19, %v47_v17 }
 0x149   :  { %4537 = vmatprep.mubr.msk.f32.mxu1 %vm152_vm3, %v5028_v20 }
 0x14a   :  { %4538 = vmatmul.mubr.msk.f32.vlgmr.msra.gmra.mxu1 %vm152_vm3, %v5030_v21 }
 0x14b   :  { %4552 = vmatprep.mubr.msk.f32.mxu1 %vm4920_vm4, %v4919_v6 }
 0x20a   :  { %v4539_v25 = vpop.f32.mrf.mxu1 }
 0x20b   :  { %v5055_v29 = vadd.f32 %v4539_v25, %v151_v26 }
 0x20c   :  { %v225_v27 = vpop.f32.mrf.mxu1 }
 0x20d   :  { %v5051_v28 = vadd.f32 %v225_v27, %v151_v26 }
 0x20f   :  { %235 = vrot.lane.b32.xlu1 %v5051_v28, %s4921_s24 }
 0x213   :  { %313 = vrot.lane.b32.xlu1 %v5055_v29, %s4921_s24 }
 0x281   :  { %v236_v30 = vpop.permute.xlu1 %235 }
 0x282   :  { %4541 = vmatpush3.xpose.msk.msra.mxu0 %vm237_vm5, %v236_v30 }
 0x283   :  { %4545 = vmatprep.subr.mxu0 %v4919_v6 }
 0x285   :  { %4543 = vmatmul.mubr.msk.f32.vlgmr.msra.gmra.mxu0 %vm237_vm5, %v5051_v28  ;;  %v314_v31 = vpop.permute.xlu1 %313 }
 0x286   :  { %4546 = vmatpush3.xpose.msk.msra.mxu0 %vm237_vm5, %v314_v31  ;;  %4547 = vmatprep.mubr.msk.f32.mxu0 %vm4920_vm4, %v4919_v6 }
 0x287   :  { %4555 = vmatprep.subr.mxu0 %v4919_v6 }
 0x289   :  { %4548 = vmatmul.mubr.msk.f32.vlgmr.msra.gmra.mxu0 %vm237_vm5, %v5055_v29 }
 0x28a   :  { %4557 = vmatprep.mubr.msk.f32.mxu0 %vm4920_vm4, %v4919_v6 }
 0x345   :  { %v308_v32 = vpop.f32.mrf.mxu0 }
 0x346   :  { %v389_v33 = vsel %vm237_vm5, %v308_v32, -inf }
 0x347   :  { %390 = vmax.xlane.f32.xlu0 %v389_v33  ;;  %v4544_v34 = vpop.f32.mrf.mxu0 }
 0x349   :  { %v385_v35 = vpop.f32.mrf.mxu0 }
 0x34a   :  { %v392_v36 = vsel %vm237_vm5, %v385_v35, -inf }
 0x34b   :  { %393 = vmax.xlane.f32.xlu1 %v392_v36  ;;  %v4549_v37 = vpop.f32.mrf.mxu0 }
 0x35c   :  { %411 = vrot.lane.b32.xlu1 %v5051_v28, %s4922_s25 }
 0x35d   :  { %487 = vrot.lane.b32.xlu0 %v5055_v29, %s4922_s25 }
 0x360   :  { %565 = vrot.lane.b32.xlu1 %v5051_v28, %s4923_s26 }
 0x364   :  { %643 = vrot.lane.b32.xlu1 %v5055_v29, %s4923_s26 }
 0x368   :  { %641 = vrot.lane.b32.xlu1 %v5055_v29, %s4924_s27 }
 0x3d0   :  { %v391_v38 = vpop.xlane.xlu0 %390 }
 0x3d1   :  { %v395_v39 = vsub.f32 %v308_v32, %v391_v38 }
 0x3d3   :  { %v397_v40 = vmul.f32 1.442695, %v395_v39 }
 0x3d4   :  { %v488_v41 = vpop.permute.xlu0 %487  ;;  %v394_v42 = vpop.xlane.xlu1 %393 }
 0x3d5   :  { %4838 = vpow2.f32 %v397_v40  ;;  %v396_v43 = vsub.f32 %v385_v35, %v394_v42  ;;  %4556 = vmatpush3.msra.mxu0 %v488_v41 }
 0x3d6   :  { %4565 = vmatprep.subr.mxu0 %v4919_v6 }
 0x3d7   :  { %v399_v44 = vmul.f32 1.442695, %v396_v43 }
 0x3d8   :  { %v412_v45 = vpop.permute.xlu1 %411 }
 0x3d9   :  { %4840 = vpow2.f32 %v399_v44  ;;  %4551 = vmatpush3.msra.mxu1 %v412_v45 }
 0x3da   :  { %4560 = vmatprep.subr.mxu1 %v4919_v6 }
 0x3dc   :  { %v566_v52 = vpop.permute.xlu1 %565 }
 0x3e0   :  { %v644_v56 = vpop.permute.xlu1 %643 }
 0x3e2   :  { %v4839_v46 = vpop.eup %4838 }
 0x3e3   :  { %v401_v47 = vsel %vm237_vm5, %v4839_v46, 0.0 }
 0x3e4   :  { %402 = vadd.xlane.f32.xlu0 %v401_v47  ;;  %v642_v59 = vpop.permute.xlu1 %641 }
 0x3e6   :  { %v4841_v48 = vpop.eup %4840 }
 0x3e7   :  { %v404_v49 = vsel %vm237_vm5, %v4841_v48, 0.0 }
 0x3e8   :  { %405 = vadd.xlane.f32.xlu0 %v404_v49 }
 0x3fe   :  { %563 = vrot.lane.b32.xlu0 %v5051_v28, %s4924_s27 }
 0x46d   :  { %v403_v50 = vpop.xlane.xlu0 %402 }
 0x46e   :  { %4842 = vrcp.f32 %v403_v50 }
 0x471   :  { %v406_v51 = vpop.xlane.xlu0 %405 }
 0x472   :  { %4844 = vrcp.f32 %v406_v51 }
 0x475   :  { %v564_v58 = vpop.permute.xlu0 %563 }
 0x47b   :  { %v4843_v53 = vpop.eup %4842 }
 0x47c   :  { %v409_v54 = vmul.f32 %v4843_v53, %v4839_v46 }
 0x47e   :  { %4553 = vmatmul.mubr.msk.f32.vlgmr.msra.gmra.mxu1 %vm237_vm5, %v409_v54 }
 0x47f   :  { %v4845_v55 = vpop.eup %4844  ;;  %4561 = vmatpush3.xpose.msk.msra.mxu1 %vm237_vm5, %v566_v52  ;;  %4562 = vmatprep.mubr.msk.f32.mxu1 %vm4920_vm4, %v4919_v6 }
 0x480   :  { %v410_v57 = vmul.f32 %v4845_v55, %v4841_v48  ;;  %4570 = vmatprep.subr.mxu1 %v4919_v6 }
 0x482   :  { %4558 = vmatmul.mubr.msk.f32.vlgmr.msra.gmra.mxu0 %vm237_vm5, %v410_v57  ;;  %4563 = vmatmul.mubr.msk.f32.vlgmr.msra.gmra.mxu1 %vm237_vm5, %v564_v58 }
 0x483   :  { %4566 = vmatpush3.xpose.msk.msra.mxu0 %vm237_vm5, %v644_v56  ;;  %4567 = vmatprep.mubr.msk.f32.mxu0 %vm4920_vm4, %v4919_v6 }
 0x484   :  { %4575 = vmatprep.subr.mxu0 %v4919_v6  ;;  %4572 = vmatprep.mubr.msk.f32.mxu1 %vm4920_vm4, %v4919_v6 }
 0x486   :  { %4568 = vmatmul.mubr.msk.f32.vlgmr.msra.gmra.mxu0 %vm237_vm5, %v642_v59 }
 0x487   :  { %4577 = vmatprep.mubr.msk.f32.mxu0 %vm4920_vm4, %v4919_v6 }
 0x53e   :  { %v483_v60 = vpop.f32.mrf.mxu1 }
 0x540   :  { %v4554_v61 = vpop.f32.mrf.mxu1 }
 0x542   :  { %v559_v62 = vpop.f32.mrf.mxu0  ;;  %v637_v63 = vpop.f32.mrf.mxu1 }
 0x543   :  { %v719_v0 = vsel %vm237_vm5, %v637_v63, -inf }
 0x544   :  { %720 = vmax.xlane.f32.xlu0 %v719_v0  ;;  %v4559_v1 = vpop.f32.mrf.mxu0  ;;  %v4564_v2 = vpop.f32.mrf.mxu1 }
 0x546   :  { %v715_v3 = vpop.f32.mrf.mxu0 }
 0x547   :  { %v722_v4 = vsel %vm237_vm5, %v715_v3, -inf }
 0x548   :  { %723 = vmax.xlane.f32.xlu1 %v722_v4  ;;  %v4569_v7 = vpop.f32.mrf.mxu0 }
 0x559   :  { %741 = vrot.lane.b32.xlu1 %v5051_v28, %s4925_s28 }
 0x55d   :  { %894 = vrot.lane.b32.xlu1 %v5010_v14, %s4926_s29 }
 0x561   :  { %979 = vrot.lane.b32.xlu1 %v5017_v15, %s4926_s29 }
 0x565   :  { %1143 = vrot.lane.b32.xlu1 %v5055_v29, %s4927_s30 }
 0x569   :  { %1141 = vrot.lane.b32.xlu1 %v5055_v29, %s4928_s9 }
 0x5cd   :  { %v721_v8 = vpop.xlane.xlu0 %720 }
 0x5ce   :  { %v725_v9 = vsub.f32 %v637_v63, %v721_v8 }
 0x5d0   :  { %v727_v10 = vmul.f32 1.442695, %v725_v9 }
 0x5d1   :  { %v724_v11 = vpop.xlane.xlu1 %723 }
 0x5d2   :  { %4846 = vpow2.f32 %v727_v10  ;;  %v726_v12 = vsub.f32 %v715_v3, %v724_v11 }
 0x5d4   :  { %v729_v16 = vmul.f32 1.442695, %v726_v12 }
 0x5d5   :  { %v742_v17 = vpop.permute.xlu1 %741 }
 0x5d6   :  { %4848 = vpow2.f32 %v729_v16  ;;  %4571 = vmatpush3.msra.mxu1 %v742_v17 }
 0x5d9   :  { %v895_v14 = vpop.permute.xlu1 %894 }
 0x5da   :  { %4580 = vmatprep.subr.mxu1 %v895_v14 }
 0x5dd   :  { %v980_v31 = vpop.permute.xlu1 %979 }
 0x5df   :  { %v4847_v15 = vpop.eup %4846 }
 0x5e0   :  { %v731_v18 = vsel %vm237_vm5, %v4847_v15, 0.0 }
 0x5e1   :  { %732 = vadd.xlane.f32.xlu0 %v731_v18  ;;  %v1144_v36 = vpop.permute.xlu1 %1143 }
 0x5e3   :  { %v4849_v19 = vpop.eup %4848 }
 0x5e4   :  { %v734_v25 = vsel %vm237_vm5, %v4849_v19, 0.0 }
 0x5e5   :  { %735 = vadd.xlane.f32.xlu0 %v734_v25  ;;  %v1142_v37 = vpop.permute.xlu1 %1141 }
 0x5fb   :  { %817 = vrot.lane.b32.xlu0 %v5055_v29, %s4925_s28 }
 0x5ff   :  { %1065 = vrot.lane.b32.xlu0 %v5051_v28, %s4927_s30 }
 0x603   :  { %1063 = vrot.lane.b32.xlu0 %v5051_v28, %s4928_s9 }
 0x66a   :  { %v733_v26 = vpop.xlane.xlu0 %732 }
 0x66b   :  { %4850 = vrcp.f32 %v733_v26 }
 0x66e   :  { %v736_v27 = vpop.xlane.xlu0 %735 }
 0x66f   :  { %4852 = vrcp.f32 %v736_v27 }
 0x672   :  { %v818_v30 = vpop.permute.xlu0 %817 }
 0x673   :  { %4576 = vmatpush3.msra.mxu0 %v818_v30 }
 0x674   :  { %4585 = vmatprep.subr.mxu0 %v980_v31 }
 0x676   :  { %v1066_v39 = vpop.permute.xlu0 %1065 }
 0x678   :  { %v4851_v32 = vpop.eup %4850 }
 0x679   :  { %v739_v33 = vmul.f32 %v4851_v32, %v4847_v15 }
 0x67a   :  { %v1064_v43 = vpop.permute.xlu0 %1063 }
 0x67b   :  { %4573 = vmatmul.mubr.msk.f32.vlgmr.msra.gmra.mxu1 %vm237_vm5, %v739_v33 }
 0x67c   :  { %v4853_v34 = vpop.eup %4852  ;;  %4581 = vmatpush3.msra.mxu1 %v895_v14 }
 0x67d   :  { %v740_v35 = vmul.f32 %v4853_v34, %v4849_v19  ;;  %4590 = vmatprep.subr.mxu1 %v4919_v6 }
 0x67f   :  { %4578 = vmatmul.mubr.msk.f32.vlgmr.msra.gmra.mxu0 %vm237_vm5, %v740_v35 }
 0x680   :  { %4587 = vmatprep.mubr.msk.f32.mxu0 %vm237_vm5, %v483_v60  ;;  %4586 = vmatpush3.msra.mxu0 %v980_v31 }
 0x681   :  { %4595 = vmatprep.subr.mxu0 %v4919_v6 }
 0x683   :  { %4588 = vmatmul.mubr.msk.f32.vlgmr.msra.gmra.mxu0 %vm237_vm5, %v559_v62 }
 0x684   :  { %4596 = vmatpush3.xpose.msk.msra.mxu0 %vm237_vm5, %v1144_v36  ;;  %4597 = vmatprep.mubr.msk.f32.mxu0 %vm4920_vm4, %v4919_v6 }
 0x685   :  { %4605 = vmatprep.subr.mxu0 %v4919_v6 }
 0x687   :  { %4598 = vmatmul.mubr.msk.f32.vlgmr.msra.gmra.mxu0 %vm237_vm5, %v1142_v37 }
 0x688   :  { %4607 = vmatprep.mubr.msk.f32.mxu0 %vm4920_vm4, %v4919_v6 }
 0x73b   :  { %v813_v38 = vpop.f32.mrf.mxu1 }
 0x73c   :  { %4582 = vmatprep.mubr.msk.f32.mxu1 %vm237_vm5, %v813_v38 }
 0x73d   :  { %v4574_v40 = vpop.f32.mrf.mxu1 }
 0x73f   :  { %v889_v41 = vpop.f32.mrf.mxu0 }
 0x740   :  { %4583 = vmatmul.mubr.msk.f32.vlgmr.msra.gmra.mxu1 %vm237_vm5, %v889_v41 }
 0x741   :  { %4591 = vmatpush3.xpose.msk.msra.mxu1 %vm237_vm5, %v1066_v39  ;;  %v4579_v42 = vpop.f32.mrf.mxu0  ;;  %4592 = vmatprep.mubr.msk.f32.mxu1 %vm4920_vm4, %v4919_v6 }
 0x742   :  { %4600 = vmatprep.subr.mxu1 %v4919_v6 }
 0x743   :  { %v5144_v44 = vpop.f32.mrf.mxu0 }
 0x744   :  { %4593 = vmatmul.mubr.msk.f32.vlgmr.msra.gmra.mxu1 %vm237_vm5, %v1064_v43 }
 0x745   :  { %v5147_v45 = vpop.f32.mrf.mxu0  ;;  %4602 = vmatprep.mubr.msk.f32.mxu1 %vm4920_vm4, %v4919_v6 }
 0x747   :  { %v1215_v46 = vpop.f32.mrf.mxu0 }
 0x748   :  { %v1222_v47 = vsel %vm237_vm5, %v1215_v46, -inf }
 0x749   :  { %1223 = vmax.xlane.f32.xlu1 %v1222_v47  ;;  %v4599_v48 = vpop.f32.mrf.mxu0 }
 0x75a   :  { %1241 = vrot.lane.b32.xlu1 %v5051_v28, %s4929_s10 }
 0x75e   :  { %1394 = vrot.lane.b32.xlu1 %v5003_v13, %s4926_s29 }
 0x762   :  { %1482 = vrot.lane.b32.xlu1 %v5051_v28, %s4930_s11 }
 0x766   :  { %1480 = vrot.lane.b32.xlu1 %v5051_v28, %s4931_s12 }
 0x7d2   :  { %v1224_v49 = vpop.xlane.xlu1 %1223 }
 0x7d3   :  { %v1226_v52 = vsub.f32 %v1215_v46, %v1224_v49 }
 0x7d5   :  { %v1229_v53 = vmul.f32 1.442695, %v1226_v52 }
 0x7d6   :  { %v1242_v50 = vpop.permute.xlu1 %1241 }
 0x7d7   :  { %4601 = vmatpush3.msra.mxu1 %v1242_v50  ;;  %4854 = vpow2.f32 %v1229_v53 }
 0x7da   :  { %v1395_v51 = vpop.permute.xlu1 %1394 }
 0x7db   :  { %4610 = vmatprep.subr.mxu1 %v1395_v51 }
 0x7de   :  { %v1483_v4 = vpop.permute.xlu1 %1482 }
 0x7e2   :  { %v1481_v9 = vpop.permute.xlu1 %1480 }
 0x7e4   :  { %v4855_v57 = vpop.eup %4854 }
 0x7e5   :  { %v1234_v59 = vsel %vm237_vm5, %v4855_v57, 0.0 }
 0x800   :  { %v4584_v54 = vpop.f32.mrf.mxu1 }
 0x801   :  { %v1060_v32 = vadd.f32 %v5144_v44, %v4584_v54 }
 0x802   :  { %v5160_v55 = vpop.f32.mrf.mxu1 }
 0x803   :  { %v1055_v34 = vadd.f32 %v5147_v45, %v5160_v55 }
 0x804   :  { %v1137_v13 = vpop.f32.mrf.mxu1 }
 0x805   :  { %v1219_v56 = vsel %vm237_vm5, %v1137_v13, -inf }
 0x806   :  { %1220 = vmax.xlane.f32.xlu0 %v1219_v56  ;;  %v4594_v58 = vpop.f32.mrf.mxu1 }
 0x80a   :  { %1235 = vadd.xlane.f32.xlu0 %v1234_v59 }
 0x88f   :  { %v1221_v60 = vpop.xlane.xlu0 %1220 }
 0x890   :  { %v1225_v61 = vsub.f32 %v1137_v13, %v1221_v60 }
 0x892   :  { %v1227_v62 = vmul.f32 1.442695, %v1225_v61 }
 0x893   :  { %v1236_v1 = vpop.xlane.xlu0 %1235 }
 0x894   :  { %4856 = vpow2.f32 %v1227_v62 }
 0x895   :  { %4858 = vrcp.f32 %v1236_v1 }
 0x8a1   :  { %v4857_v63 = vpop.eup %4856 }
 0x8a2   :  { %v1231_v0 = vsel %vm237_vm5, %v4857_v63, 0.0  ;;  %v4859_v3 = vpop.eup %4858 }
 0x8a3   :  { %1232 = vadd.xlane.f32.xlu0 %v1231_v0  ;;  %v1240_v8 = vmul.f32 %v4859_v3, %v4855_v57 }
 0x8b9   :  { %1317 = vrot.lane.b32.xlu0 %v5055_v29, %s4929_s10 }
 0x8bd   :  { %1560 = vrot.lane.b32.xlu0 %v5055_v29, %s4930_s11 }
 0x8c1   :  { %1558 = vrot.lane.b32.xlu0 %v5055_v29, %s4931_s12 }
 0x92c   :  { %v1233_v2 = vpop.xlane.xlu0 %1232 }
 0x92d   :  { %4860 = vrcp.f32 %v1233_v2 }
 0x930   :  { %v1318_v7 = vpop.permute.xlu0 %1317 }
 0x931   :  { %4606 = vmatpush3.msra.mxu0 %v1318_v7 }
 0x932   :  { %4608 = vmatmul.mubr.msk.f32.vlgmr.msra.gmra.mxu0 %vm237_vm5, %v1240_v8  ;;  %4615 = vmatprep.subr.mxu0 %v4919_v6 }
 0x933   :  { %4616 = vmatpush3.xpose.msk.msra.mxu0 %vm237_vm5, %v1483_v4  ;;  %4617 = vmatprep.mubr.msk.f32.mxu0 %vm4920_vm4, %v4919_v6 }
 0x934   :  { %4625 = vmatprep.subr.mxu0 %v4919_v6  ;;  %v1561_v18 = vpop.permute.xlu0 %1560 }
 0x936   :  { %4618 = vmatmul.mubr.msk.f32.vlgmr.msra.gmra.mxu0 %vm237_vm5, %v1481_v9 }
 0x937   :  { %4627 = vmatprep.mubr.msk.f32.mxu0 %vm4920_vm4, %v4919_v6 }
 0x938   :  { %v1559_v26 = vpop.permute.xlu0 %1558 }
 0x93a   :  { %v4861_v10 = vpop.eup %4860 }
 0x93b   :  { %v1239_v11 = vmul.f32 %v4861_v10, %v4857_v63 }
 0x93d   :  { %4603 = vmatmul.mubr.msk.f32.vlgmr.msra.gmra.mxu1 %vm237_vm5, %v1239_v11 }
 0x93e   :  { %4611 = vmatpush3.msra.mxu1 %v1395_v51 }
 0x93f   :  { %4620 = vmatprep.subr.mxu1 %v4919_v6 }
 0x9f2   :  { %v1389_v12 = vpop.f32.mrf.mxu0 }
 0x9f4   :  { %v4609_v16 = vpop.f32.mrf.mxu0 }
 0x9f6   :  { %v1554_v17 = vpop.f32.mrf.mxu0 }
 0x9f7   :  { %v1636_v14 = vsel %vm237_vm5, %v1554_v17, -inf }
 0x9f8   :  { %1637 = vmax.xlane.f32.xlu1 %v1636_v14  ;;  %v4619_v15 = vpop.f32.mrf.mxu0 }
 0x9f9   :  { %v136_v15 = vld [vmem:[%s5589_s3 + $0x28] sm:$0xff] }
 0x9fd   :  { %v1313_v19 = vpop.f32.mrf.mxu1 }
 0x9fe   :  { %4612 = vmatprep.mubr.msk.f32.mxu1 %vm237_vm5, %v1313_v19  ;;  %v132_v19 = vld [vmem:[%s5589_s3 + $0x8] sm:$0xff] }
 0x9ff   :  { %v4604_v25 = vpop.f32.mrf.mxu1  ;;  %4613 = vmatmul.mubr.msk.f32.vlgmr.msra.gmra.mxu1 %vm237_vm5, %v1389_v12 }
 0xa00   :  { %4621 = vmatpush3.xpose.msk.msra.mxu1 %vm237_vm5, %v1561_v18  ;;  %4622 = vmatprep.mubr.msk.f32.mxu1 %vm4920_vm4, %v4919_v6  ;;  %v134_v18 = vld [vmem:[%s5589_s3 + $0x18] sm:$0xff] }
 0xa01   :  { %4630 = vmatprep.subr.mxu1 %v4919_v6  ;;  %v146_v25 = vld [vmem:[%s5592_s4 + $0x38] sm:$0xff] }
 0xa03   :  { %4623 = vmatmul.mubr.msk.f32.vlgmr.msra.gmra.mxu1 %vm237_vm5, %v1559_v26  ;;  %v145_v26 = vld [vmem:[%s5592_s4 + $0x30] sm:$0xff] }
 0xa04   :  { %4632 = vmatprep.mubr.msk.f32.mxu1 %vm4920_vm4, %v4919_v6 }
 0xa81   :  { %v1638_v27 = vpop.xlane.xlu1 %1637 }
 0xa82   :  { %v1642_v30 = vsub.f32 %v1554_v17, %v1638_v27  ;;  %v144_v27 = vld [vmem:[%s5592_s4 + $0x28] sm:$0xff] }
 0xa84   :  { %v1644_v31 = vmul.f32 1.442695, %v1642_v30  ;;  %v143_v30 = vld [vmem:[%s5592_s4 + $0x20] sm:$0xff] }
 0xa86   :  { %4862 = vpow2.f32 %v1644_v31 }
 0xa93   :  { %v4863_v40 = vpop.eup %4862 }
 0xa94   :  { %v1648_v42 = vsel %vm237_vm5, %v4863_v40, 0.0 }
 0xabf   :  { %v4614_v33 = vpop.f32.mrf.mxu1 }
 0xac0   :  { %v1479_v35 = vadd.f32 %v4614_v33, %v1060_v32 }
 0xac1   :  { %v1469_v36 = vpop.f32.mrf.mxu1 }
 0xac2   :  { %v1478_v37 = vadd.f32 %v1469_v36, %v1055_v34 }
 0xac3   :  { %v1632_v38 = vpop.f32.mrf.mxu1 }
 0xac4   :  { %v1639_v39 = vsel %vm237_vm5, %v1632_v38, -inf }
 0xac5   :  { %1640 = vmax.xlane.f32.xlu0 %v1639_v39  ;;  %v4624_v41 = vpop.f32.mrf.mxu1 }
 0xac9   :  { %1649 = vadd.xlane.f32.xlu0 %v1648_v42 }
 0xadf   :  { %1658 = vrot.lane.b32.xlu0 %v5051_v28, %s4932_s13 }
 0xb4e   :  { %v1641_v43 = vpop.xlane.xlu0 %1640 }
 0xb4f   :  { %v1643_v44 = vsub.f32 %v1632_v38, %v1641_v43  ;;  %v1940_v38 = vsub.s32 5, %v5036_v22 }
 0xb51   :  { %v1646_v46 = vmul.f32 1.442695, %v1643_v44  ;;  %v1941_v42 = vrot.slane %v5046_v24, %v1940_v38 }
 0xb52   :  { %v1650_v45 = vpop.xlane.xlu0 %1649 }
 0xb53   :  { %4864 = vpow2.f32 %v1646_v46 }
 0xb54   :  { %4866 = vrcp.f32 %v1650_v45 }
 0xb56   :  { %v1659_v47 = vpop.permute.xlu0 %1658 }
 0xb57   :  { %4626 = vmatpush3.msra.mxu0 %v1659_v47 }
 0xb60   :  { %v4865_v48 = vpop.eup %4864 }
 0xb61   :  { %v4867_v49 = vpop.eup %4866  ;;  %v1651_v50 = vsel %vm237_vm5, %v4865_v48, 0.0 }
 0xb62   :  { %1652 = vadd.xlane.f32.xlu1 %v1651_v50  ;;  %v1656_v51 = vmul.f32 %v4867_v49, %v4863_v40  ;;  %v142_v49 = vld [vmem:[%s5592_s4 + $0x18] sm:$0xff]  ;;  %v141_v50 = vld [vmem:[%s5592_s4 + $0x10] sm:$0xff] }
 0xb64   :  { %4628 = vmatmul.mubr.msk.f32.vlgmr.msra.gmra.mxu0 %vm237_vm5, %v1656_v51  ;;  %v140_v51 = vld [vmem:[%s5592_s4 + $0x8] sm:$0xff] }
 0xb73   :  { %1734 = vrot.lane.b32.xlu1 %v5055_v29, %s4932_s13 }
 0xb77   :  { %1811 = vrot.lane.b32.xlu1 %v4993_v5, %s4926_s29  ;;  %v1899_v5 = vsub.s32 1, %v5036_v22 }
 0xb79   :  { %v1900_v58 = vrot.slane %v5046_v24, %v1899_v5 }
 0xbeb   :  { %v1653_v28 = vpop.xlane.xlu1 %1652 }
 0xbec   :  { %4868 = vrcp.f32 %v1653_v28  ;;  %v139_v28 = vld [vmem:[%s5592_s4] sm:$0xff] }
 0xbef   :  { %v1735_v52 = vpop.permute.xlu1 %1734 }
 0xbf0   :  { %4631 = vmatpush3.msra.mxu1 %v1735_v52  ;;  %v1946_v52 = vsub.s32 2, %v5036_v22 }
 0xbf3   :  { %v1812_v53 = vpop.permute.xlu1 %1811 }
 0xbf4   :  { %4635 = vmatprep.subr.mxu0 %v1812_v53 }
 0xbf5   :  { %4636 = vmatpush3.msra.mxu0 %v1812_v53  ;;  %v1947_v53 = vrot.slane %v5046_v24, %v1946_v52 }
 0xbf6   :  { %4651 = vmatprep.subr.mxu0 %v146_v25 }
 0xbf9   :  { %v4869_v54 = vpop.eup %4868 }
 0xbfa   :  { %v1657_v55 = vmul.f32 %v4869_v54, %v4865_v48 }
 0xbfc   :  { %4633 = vmatmul.mubr.msk.f32.vlgmr.msra.gmra.mxu1 %vm237_vm5, %v1657_v55 }
 0xc24   :  { %v1730_v13 = vpop.f32.mrf.mxu0 }
 0xc25   :  { %4637 = vmatprep.mubr.msk.f32.mxu0 %vm237_vm5, %v1730_v13 }
 0xc26   :  { %v4629_v56 = vpop.f32.mrf.mxu0 }
 0xcbc   :  { %v1806_v57 = vpop.f32.mrf.mxu1 }
 0xcbd   :  { %4638 = vmatmul.mubr.msk.f32.vlgmr.msra.gmra.mxu0 %vm237_vm5, %v1806_v57 }
 0xcbe   :  { %v4634_v29 = vpop.f32.mrf.mxu1  ;;  %4652 = vmatpush3.msra.mxu0 %v146_v25 }
 0xcbf   :  { %4653 = vmatprep.subr.mxu0 %v145_v26 }
 0xcc0   :  { %4654 = vmatpush3.msra.mxu0 %v145_v26 }
 0xcc1   :  { %4655 = vmatprep.subr.mxu0 %v144_v27 }
 0xcc2   :  { %4656 = vmatpush3.msra.mxu0 %v144_v27 }
 0xcc3   :  { %4657 = vmatprep.subr.mxu0 %v143_v30 }
 0xcc4   :  { %4658 = vmatpush3.msra.mxu0 %v143_v30 }
 0xcc5   :  { %4659 = vmatprep.subr.mxu0 %v142_v49 }
 0xcc6   :  { %4660 = vmatpush3.msra.mxu0 %v142_v49 }
 0xcc7   :  { %4661 = vmatprep.subr.mxu0 %v141_v50 }
 0xcc8   :  { %4662 = vmatpush3.msra.mxu0 %v141_v50 }
 0xcc9   :  { %4663 = vmatprep.subr.mxu0 %v140_v51 }
 0xcca   :  { %4664 = vmatpush3.msra.mxu0 %v140_v51 }
 0xccb   :  { %4665 = vmatprep.subr.mxu0 %v139_v28 }
 0xccc   :  { %4666 = vmatpush3.msra.mxu0 %v139_v28 }
 0xccd   :  { %4686 = vmatprep.subr.mxu0 %v4919_v6 }
 0xd7d   :  { %v4639_v59 = vpop.f32.mrf.mxu0 }
 0xd7e   :  { %v1896_v60 = vadd.f32 %v4639_v59, %v1479_v35 }
 0xd7f   :  { %v1886_v61 = vpop.f32.mrf.mxu0 }
 0xd80   :  { %v1902_v62 = vadd.f32 %v1900_v58, %v1896_v60  ;;  %v1895_v63 = vadd.f32 %v1886_v61, %v1478_v37  ;;  %v1934_v37 = vsub.s32 4, %v5036_v22 }
 0xd82   :  { %v1901_v0 = vadd.f32 %v1900_v58, %v1895_v63  ;;  %v1904_v1 = vadd.f32 %v1902_v62, %v5030_v21  ;;  %v1935_v39 = vrot.slane %v5046_v24, %v1934_v37  ;;  %v2033_v58 = vsub.s32 3, %v5036_v22 }
 0xd84   :  { %v1908_v2 = vsel %vm152_vm3, %v1904_v1, 0.0  ;;  %v1903_v3 = vadd.f32 %v1901_v0, %v5028_v20  ;;  %v138_v20 = vld [vmem:[%s5589_s3 + $0x38] sm:$0xff]  ;;  %v2034_v59 = vrot.slane %v5046_v24, %v2033_v58 }
 0xd85   :  { %1909 = vadd.xlane.f32.xlu1 %v1908_v2  ;;  %4640 = vmatprep.subr.mxu1 %v138_v20 }
 0xd86   :  { %v1905_v4 = vsel %vm152_vm3, %v1903_v3, 0.0  ;;  %4641 = vmatpush3.msra.mxu1 %v138_v20  ;;  %v5289_v20 = vld [vmem:[%s5589_s3 + $0x60] sm:$0xff] }
 0xd87   :  { %1906 = vadd.xlane.f32.xlu0 %v1905_v4  ;;  %4642 = vmatprep.subr.mxu1 %v136_v15 }
 0xd88   :  { %4643 = vmatpush3.msra.mxu1 %v136_v15  ;;  %v5296_v15 = vld [vmem:[%s5589_s3 + $0x50] sm:$0xff] }
 0xd89   :  { %4644 = vmatprep.subr.mxu1 %v134_v18 }
 0xd8a   :  { %4645 = vmatpush3.msra.mxu1 %v134_v18  ;;  %v5303_v18 = vld [vmem:[%s5589_s3 + $0x40] sm:$0xff] }
 0xd8b   :  { %4646 = vmatprep.subr.mxu1 %v132_v19 }
 0xd8c   :  { %4647 = vmatpush3.msra.mxu1 %v132_v19 }
 0xe0e   :  { %v1910_v7 = vpop.xlane.xlu1 %1909 }
 0xe0f   :  { %v1913_v8 = vmul.f32 0.03125, %v1910_v7 }
 0xe10   :  { %v1907_v9 = vpop.xlane.xlu0 %1906 }
 0xe11   :  { %v1912_v10 = vmul.f32 0.03125, %v1907_v9  ;;  %v1915_v11 = vsub.f32 %v1904_v1, %v1913_v8 }
 0xe13   :  { %v1914_v12 = vsub.f32 %v1903_v3, %v1912_v10  ;;  %v1917_v14 = vmul.f32 %v1915_v11, %v1915_v11 }
 0xe15   :  { %v1916_v16 = vmul.f32 %v1914_v12, %v1914_v12  ;;  %v1921_v21 = vsel %vm152_vm3, %v1917_v14, 0.0 }
 0xe17   :  { %v1918_v17 = vsel %vm152_vm3, %v1916_v16, 0.0 }
 0xe18   :  { %1919 = vadd.xlane.f32.xlu0 %v1918_v17 }
 0xe1c   :  { %1922 = vadd.xlane.f32.xlu0 %v1921_v21  ;;  %v5284_v21 = vld [vmem:[%s5589_s3 + $0x70] sm:$0xff] }
 0xe1d   :  { %4670 = vmatprep.subr.mxu1 %v5284_v21 }
 0xea1   :  { %v1920_v31 = vpop.xlane.xlu0 %1919 }
 0xea2   :  { %v1924_v32 = vmul.f32 0.03125, %v1920_v31 }
 0xea4   :  { %v1926_v33 = vadd.f32 1e-05, %v1924_v32  ;;  %v2147_v32 = vsub.s32 6, %v5036_v22 }
 0xea5   :  { %v1923_v34 = vpop.xlane.xlu0 %1922 }
 0xea6   :  { %4870 = vrsqrt.f32 %v1926_v33  ;;  %v1925_v35 = vmul.f32 0.03125, %v1923_v34  ;;  %v2148_v34 = vrot.slane %v5046_v24, %v2147_v32 }
 0xea8   :  { %v1927_v36 = vadd.f32 1e-05, %v1925_v35  ;;  %v2153_v35 = vsub.s32 7, %v5036_v22 }
 0xeaa   :  { %4872 = vrsqrt.f32 %v1927_v36 }
 0xeb3   :  { %v4871_v40 = vpop.eup %4870 }
 0xeb4   :  { %v1930_v41 = vmul.f32 %v4871_v40, %v1914_v12 }
 0xeb6   :  { %v1936_v43 = vmul.f32 %v1935_v39, %v1930_v41 }
 0xeb7   :  { %v4873_v44 = vpop.eup %4872 }
 0xeb8   :  { %v1931_v46 = vmul.f32 %v4873_v44, %v1915_v11  ;;  %v1942_v45 = vadd.f32 %v1941_v42, %v1936_v43 }
 0xeba   :  { %v1937_v47 = vmul.f32 %v1935_v39, %v1931_v46  ;;  %4648 = vmatprep.mubr.msk.f32.mxu1 %vm152_vm3, %v1942_v45 }
 0xebc   :  { %v1943_v48 = vadd.f32 %v1941_v42, %v1937_v47  ;;  %v2154_v42 = vrot.slane %v5046_v24, %v2153_v35 }
 0xebe   :  { %4649 = vmatmul.mubr.msk.f32.vlgmr.msra.gmra.mxu1 %vm152_vm3, %v1943_v48 }
 0xebf   :  { %4671 = vmatpush3.msra.mxu1 %v5284_v21 }
 0xec0   :  { %4672 = vmatprep.subr.mxu1 %v5289_v20 }
 0xec1   :  { %4673 = vmatpush3.msra.mxu1 %v5289_v20 }
 0xec2   :  { %4674 = vmatprep.subr.mxu1 %v5296_v15 }
 0xec3   :  { %4675 = vmatpush3.msra.mxu1 %v5296_v15 }
 0xec4   :  { %4676 = vmatprep.subr.mxu1 %v5303_v18 }
 0xec5   :  { %4677 = vmatpush3.msra.mxu1 %v5303_v18 }
 0xec6   :  { %4681 = vmatprep.subr.mxu1 %v4919_v6 }
 0xf7e   :  { %v4650_v54 = vpop.f32.mrf.mxu1 }
 0xf7f   :  { %v2026_v55 = vadd.f32 %v4650_v54, %v1947_v53 }
 0xf80   :  { %v2020_v13 = vpop.f32.mrf.mxu1 }
 0xf81   :  { %v2021_v56 = vadd.f32 %v2020_v13, %v1947_v53  ;;  %v2030_v29 = vmax.f32 %v2026_v55, 0.0 }
 0xf83   :  { %v2029_v57 = vmax.f32 %v2021_v56, 0.0 }
 0xf85   :  { %4667 = vmatprep.mubr.msk.f32.mxu0 %vm2035_vm6, %v2029_v57 }
 0xf86   :  { %4668 = vmatmul.mubr.msk.f32.vlgmr.msra.gmra.mxu0 %vm2035_vm6, %v2030_v29 }
 0xf87   :  { %4688 = vmatprep.mubr.msk.f32.mxu0 %vm4920_vm4, %v4919_v6 }
0x1046   :  { %v4669_v60 = vpop.f32.mrf.mxu0 }
0x1047   :  { %v2114_v61 = vadd.f32 %v4669_v60, %v2034_v59 }
0x1048   :  { %v2108_v62 = vpop.f32.mrf.mxu0 }
0x1049   :  { %v2109_v63 = vadd.f32 %v2108_v62, %v2034_v59  ;;  %v2118_v0 = vadd.f32 %v2114_v61, %v1943_v48 }
0x104b   :  { %v2122_v1 = vsel %vm152_vm3, %v2118_v0, 0.0  ;;  %v2117_v2 = vadd.f32 %v2109_v63, %v1942_v45  ;;  %v5331_v45 = vld [vmem:[%s5591_s5 + $0x8] sm:$0xff] }
0x104c   :  { %2123 = vadd.xlane.f32.xlu0 %v2122_v1  ;;  %v2180_v24 = vrot.slane %v5331_v45, %v150_v23 }
0x104d   :  { %v2119_v3 = vsel %vm152_vm3, %v2117_v2, 0.0 }
0x104e   :  { %2120 = vadd.xlane.f32.xlu1 %v2119_v3 }
0x10d5   :  { %v2124_v4 = vpop.xlane.xlu0 %2123 }
0x10d6   :  { %v2126_v7 = vmul.f32 0.03125, %v2124_v4 }
0x10d7   :  { %v2121_v8 = vpop.xlane.xlu1 %2120 }
0x10d8   :  { %v2128_v9 = vsub.f32 %v2118_v0, %v2126_v7  ;;  %v2125_v10 = vmul.f32 0.03125, %v2121_v8 }
0x10da   :  { %v2127_v11 = vsub.f32 %v2117_v2, %v2125_v10  ;;  %v2130_v12 = vmul.f32 %v2128_v9, %v2128_v9 }
0x10dc   :  { %v2134_v16 = vsel %vm152_vm3, %v2130_v12, 0.0  ;;  %v2129_v17 = vmul.f32 %v2127_v11, %v2127_v11 }
0x10dd   :  { %2135 = vadd.xlane.f32.xlu0 %v2134_v16 }
0x10de   :  { %v2131_v14 = vsel %vm152_vm3, %v2129_v17, 0.0 }
0x10df   :  { %2132 = vadd.xlane.f32.xlu1 %v2131_v14 }
0x1166   :  { %v2136_v19 = vpop.xlane.xlu0 %2135 }
0x1167   :  { %v2138_v25 = vmul.f32 0.03125, %v2136_v19 }
0x1168   :  { %v2133_v26 = vpop.xlane.xlu1 %2132 }
0x1169   :  { %v2140_v27 = vadd.f32 1e-05, %v2138_v25  ;;  %v2137_v30 = vmul.f32 0.03125, %v2133_v26 }
0x116b   :  { %4874 = vrsqrt.f32 %v2140_v27  ;;  %v2139_v31 = vadd.f32 1e-05, %v2137_v30 }
0x116d   :  { %4876 = vrsqrt.f32 %v2139_v31 }
0x1178   :  { %v4875_v33 = vpop.eup %4874 }
0x1179   :  { %v2144_v36 = vmul.f32 %v4875_v33, %v2128_v9 }
0x117a   :  { %v4877_v39 = vpop.eup %4876 }
0x117b   :  { %v2143_v40 = vmul.f32 %v4877_v39, %v2127_v11  ;;  %v2150_v41 = vmul.f32 %v2148_v34, %v2144_v36 }
0x117d   :  { %v2149_v43 = vmul.f32 %v2148_v34, %v2143_v40  ;;  %v5320_v46 = vadd.f32 %v2154_v42, %v2150_v41 }
0x117f   :  { %v5318_v44 = vadd.f32 %v2154_v42, %v2149_v43 }
0x1181   :  { %4678 = vmatprep.mubr.msk.f32.mxu1 %vm152_vm3, %v5318_v44 }
0x1182   :  { %4679 = vmatmul.mubr.msk.f32.vlgmr.msra.gmra.mxu1 %vm152_vm3, %v5320_v46 }
0x1183   :  { %4683 = vmatprep.mubr.msk.f32.mxu1 %vm4920_vm4, %v4919_v6 }
0x1242   :  { %v4680_v47 = vpop.f32.mrf.mxu1 }
0x1243   :  { %v5336_v48 = vadd.f32 %v4680_v47, %v2180_v24 }
0x1244   :  { %v2253_v49 = vpop.f32.mrf.mxu1 }
0x1245   :  { %v5338_v50 = vadd.f32 %v2253_v49, %v2180_v24  ;;  %2340 = vrot.lane.b32.xlu0 %v5336_v48, %s4921_s24 }
0x1247   :  { %2263 = vrot.lane.b32.xlu1 %v5338_v50, %s4921_s24 }
0x12b7   :  { %v2341_v51 = vpop.permute.xlu0 %2340 }
0x12b8   :  { %4687 = vmatpush3.xpose.msk.msra.mxu0 %vm237_vm5, %v2341_v51 }
0x12b9   :  { %v2264_v28 = vpop.permute.xlu1 %2263  ;;  %4696 = vmatprep.subr.mxu0 %v4919_v6 }
0x12ba   :  { %4682 = vmatpush3.xpose.msk.msra.mxu1 %vm237_vm5, %v2264_v28 }
0x12bb   :  { %4689 = vmatmul.mubr.msk.f32.vlgmr.msra.gmra.mxu0 %vm237_vm5, %v5336_v48  ;;  %4691 = vmatprep.subr.mxu1 %v4919_v6 }
0x12bc   :  { %4698 = vmatprep.mubr.msk.f32.mxu0 %vm4920_vm4, %v4919_v6 }
0x12bd   :  { %4684 = vmatmul.mubr.msk.f32.vlgmr.msra.gmra.mxu1 %vm237_vm5, %v5338_v50 }
0x12be   :  { %4693 = vmatprep.mubr.msk.f32.mxu1 %vm4920_vm4, %v4919_v6 }
0x137b   :  { %v2412_v23 = vpop.f32.mrf.mxu0 }
0x137c   :  { %v2419_v53 = vsel %vm237_vm5, %v2412_v23, -inf }
0x137d   :  { %2420 = vmax.xlane.f32.xlu0 %v2419_v53  ;;  %v2335_v54 = vpop.f32.mrf.mxu1  ;;  %v4690_v55 = vpop.f32.mrf.mxu0 }
0x137e   :  { %v2416_v13 = vsel %vm237_vm5, %v2335_v54, -inf }
0x137f   :  { %2417 = vmax.xlane.f32.xlu1 %v2416_v13  ;;  %v4685_v56 = vpop.f32.mrf.mxu1 }
0x1390   :  { %2438 = vrot.lane.b32.xlu1 %v5338_v50, %s4922_s25 }
0x1393   :  { %2514 = vrot.lane.b32.xlu0 %v5336_v48, %s4922_s25 }
0x1394   :  { %2592 = vrot.lane.b32.xlu1 %v5338_v50, %s4923_s26 }
0x1398   :  { %2670 = vrot.lane.b32.xlu1 %v5336_v48, %s4923_s26 }
0x1406   :  { %v2421_v57 = vpop.xlane.xlu0 %2420 }
0x1407   :  { %v2423_v29 = vsub.f32 %v2412_v23, %v2421_v57 }
0x1408   :  { %v2418_v59 = vpop.xlane.xlu1 %2417 }
0x1409   :  { %v2426_v60 = vmul.f32 1.442695, %v2423_v29  ;;  %v2422_v61 = vsub.f32 %v2335_v54, %v2418_v59 }
0x140a   :  { %v2515_v62 = vpop.permute.xlu0 %2514 }
0x140b   :  { %4878 = vpow2.f32 %v2426_v60  ;;  %v2424_v63 = vmul.f32 1.442695, %v2422_v61  ;;  %4697 = vmatpush3.msra.mxu0 %v2515_v62 }
0x140c   :  { %v2439_v0 = vpop.permute.xlu1 %2438  ;;  %4706 = vmatprep.subr.mxu0 %v4919_v6 }
0x140d   :  { %4880 = vpow2.f32 %v2424_v63  ;;  %4692 = vmatpush3.msra.mxu1 %v2439_v0 }
0x140e   :  { %4701 = vmatprep.subr.mxu1 %v4919_v6 }
0x1410   :  { %v2593_v7 = vpop.permute.xlu1 %2592 }
0x1414   :  { %v2671_v8 = vpop.permute.xlu1 %2670 }
0x1418   :  { %v4879_v1 = vpop.eup %4878 }
0x1419   :  { %v2431_v2 = vsel %vm237_vm5, %v4879_v1, 0.0 }
0x141a   :  { %v4881_v3 = vpop.eup %4880  ;;  %2432 = vadd.xlane.f32.xlu0 %v2431_v2 }
0x141b   :  { %v2428_v4 = vsel %vm237_vm5, %v4881_v3, 0.0 }
0x141c   :  { %2429 = vadd.xlane.f32.xlu1 %v2428_v4 }
0x142d   :  { %2668 = vrot.lane.b32.xlu1 %v5336_v48, %s4924_s27 }
0x1430   :  { %2590 = vrot.lane.b32.xlu0 %v5338_v50, %s4924_s27 }
0x14a3   :  { %v2433_v9 = vpop.xlane.xlu0 %2432 }
0x14a4   :  { %4882 = vrcp.f32 %v2433_v9 }
0x14a5   :  { %v2430_v10 = vpop.xlane.xlu1 %2429 }
0x14a6   :  { %4884 = vrcp.f32 %v2430_v10 }
0x14a7   :  { %v2591_v19 = vpop.permute.xlu0 %2590 }
0x14a9   :  { %v2669_v14 = vpop.permute.xlu1 %2668 }
0x14b1   :  { %v4883_v11 = vpop.eup %4882 }
0x14b2   :  { %v2437_v12 = vmul.f32 %v4883_v11, %v4879_v1 }
0x14b3   :  { %v4885_v16 = vpop.eup %4884 }
0x14b4   :  { %4699 = vmatmul.mubr.msk.f32.vlgmr.msra.gmra.mxu0 %vm237_vm5, %v2437_v12  ;;  %v2436_v17 = vmul.f32 %v4885_v16, %v4881_v3 }
0x14b5   :  { %4707 = vmatpush3.xpose.msk.msra.mxu0 %vm237_vm5, %v2671_v8  ;;  %4708 = vmatprep.mubr.msk.f32.mxu0 %vm4920_vm4, %v4919_v6 }
0x14b6   :  { %4694 = vmatmul.mubr.msk.f32.vlgmr.msra.gmra.mxu1 %vm237_vm5, %v2436_v17  ;;  %4716 = vmatprep.subr.mxu0 %v4919_v6 }
0x14b7   :  { %4702 = vmatpush3.xpose.msk.msra.mxu1 %vm237_vm5, %v2593_v7  ;;  %4703 = vmatprep.mubr.msk.f32.mxu1 %vm4920_vm4, %v4919_v6 }
0x14b8   :  { %4709 = vmatmul.mubr.msk.f32.vlgmr.msra.gmra.mxu0 %vm237_vm5, %v2669_v14  ;;  %4711 = vmatprep.subr.mxu1 %v4919_v6 }
0x14b9   :  { %4718 = vmatprep.mubr.msk.f32.mxu0 %vm4920_vm4, %v4919_v6 }
0x14ba   :  { %4704 = vmatmul.mubr.msk.f32.vlgmr.msra.gmra.mxu1 %vm237_vm5, %v2591_v19 }
0x14bb   :  { %4713 = vmatprep.mubr.msk.f32.mxu1 %vm4920_vm4, %v4919_v6 }
0x1574   :  { %v2586_v25 = vpop.f32.mrf.mxu0 }
0x1576   :  { %v2510_v26 = vpop.f32.mrf.mxu1  ;;  %v4700_v27 = vpop.f32.mrf.mxu0 }
0x1578   :  { %v4695_v30 = vpop.f32.mrf.mxu1  ;;  %v2742_v31 = vpop.f32.mrf.mxu0 }
0x1579   :  { %v2749_v33 = vsel %vm237_vm5, %v2742_v31, -inf }
0x157a   :  { %2750 = vmax.xlane.f32.xlu1 %v2749_v33  ;;  %v2664_v34 = vpop.f32.mrf.mxu1  ;;  %v4710_v36 = vpop.f32.mrf.mxu0 }
0x157b   :  { %v2746_v39 = vsel %vm237_vm5, %v2664_v34, -inf }
0x157c   :  { %2747 = vmax.xlane.f32.xlu0 %v2746_v39  ;;  %v4705_v40 = vpop.f32.mrf.mxu1 }
0x158b   :  { %2768 = vrot.lane.b32.xlu1 %v5338_v50, %s4925_s28 }
0x158f   :  { %2921 = vrot.lane.b32.xlu1 %v5296_v15, %s4926_s29 }
0x1593   :  { %3006 = vrot.lane.b32.xlu1 %v5303_v18, %s4926_s29 }
0x1597   :  { %3170 = vrot.lane.b32.xlu1 %v5336_v48, %s4927_s30 }
0x159b   :  { %3168 = vrot.lane.b32.xlu1 %v5336_v48, %s4928_s9 }
0x1603   :  { %v2751_v41 = vpop.xlane.xlu1 %2750 }
0x1604   :  { %v2753_v42 = vsub.f32 %v2742_v31, %v2751_v41 }
0x1605   :  { %v2748_v43 = vpop.xlane.xlu0 %2747 }
0x1606   :  { %v2756_v24 = vmul.f32 1.442695, %v2753_v42  ;;  %v2752_v47 = vsub.f32 %v2664_v34, %v2748_v43 }
0x1607   :  { %v2769_v49 = vpop.permute.xlu1 %2768 }
0x1608   :  { %4886 = vpow2.f32 %v2756_v24  ;;  %v2754_v51 = vmul.f32 1.442695, %v2752_v47  ;;  %4712 = vmatpush3.msra.mxu1 %v2769_v49 }
0x160a   :  { %4888 = vpow2.f32 %v2754_v51 }
0x160b   :  { %v2922_v15 = vpop.permute.xlu1 %2921 }
0x160c   :  { %4721 = vmatprep.subr.mxu1 %v2922_v15 }
0x160f   :  { %v3007_v56 = vpop.permute.xlu1 %3006 }
0x1613   :  { %v3171_v60 = vpop.permute.xlu1 %3170 }
0x1615   :  { %v4887_v28 = vpop.eup %4886 }
0x1616   :  { %v2761_v18 = vsel %vm237_vm5, %v4887_v28, 0.0 }
0x1617   :  { %v4889_v23 = vpop.eup %4888  ;;  %2762 = vadd.xlane.f32.xlu0 %v2761_v18  ;;  %v3169_v62 = vpop.permute.xlu1 %3168 }
0x1618   :  { %v2758_v53 = vsel %vm237_vm5, %v4889_v23, 0.0 }
0x161b   :  { %2759 = vadd.xlane.f32.xlu0 %v2758_v53 }
0x1631   :  { %2844 = vrot.lane.b32.xlu0 %v5336_v48, %s4925_s28 }
0x1635   :  { %3092 = vrot.lane.b32.xlu0 %v5338_v50, %s4927_s30 }
0x1639   :  { %3090 = vrot.lane.b32.xlu0 %v5338_v50, %s4928_s9 }
0x16a0   :  { %v2763_v54 = vpop.xlane.xlu0 %2762 }
0x16a1   :  { %4890 = vrcp.f32 %v2763_v54 }
0x16a4   :  { %v2760_v55 = vpop.xlane.xlu0 %2759 }
0x16a5   :  { %4892 = vrcp.f32 %v2760_v55 }
0x16a8   :  { %v2845_v13 = vpop.permute.xlu0 %2844 }
0x16a9   :  { %4717 = vmatpush3.msra.mxu0 %v2845_v13 }
0x16aa   :  { %4726 = vmatprep.subr.mxu0 %v3007_v56 }
0x16ac   :  { %v3093_v1 = vpop.permute.xlu0 %3092 }
0x16ae   :  { %v4891_v57 = vpop.eup %4890 }
0x16af   :  { %v2767_v29 = vmul.f32 %v4891_v57, %v4887_v28 }
0x16b0   :  { %v3091_v9 = vpop.permute.xlu0 %3090 }
0x16b1   :  { %4719 = vmatmul.mubr.msk.f32.vlgmr.msra.gmra.mxu0 %vm237_vm5, %v2767_v29 }
0x16b2   :  { %v4893_v59 = vpop.eup %4892  ;;  %4728 = vmatprep.mubr.msk.f32.mxu0 %vm237_vm5, %v2510_v26  ;;  %4727 = vmatpush3.msra.mxu0 %v3007_v56 }
0x16b3   :  { %4736 = vmatprep.subr.mxu0 %v4919_v6  ;;  %v2766_v61 = vmul.f32 %v4893_v59, %v4889_v23 }
0x16b5   :  { %4714 = vmatmul.mubr.msk.f32.vlgmr.msra.gmra.mxu1 %vm237_vm5, %v2766_v61  ;;  %4729 = vmatmul.mubr.msk.f32.vlgmr.msra.gmra.mxu0 %vm237_vm5, %v2586_v25 }
0x16b6   :  { %4737 = vmatpush3.xpose.msk.msra.mxu0 %vm237_vm5, %v3171_v60  ;;  %4738 = vmatprep.mubr.msk.f32.mxu0 %vm4920_vm4, %v4919_v6 }
0x16b7   :  { %4722 = vmatpush3.msra.mxu1 %v2922_v15  ;;  %4746 = vmatprep.subr.mxu0 %v4919_v6 }
0x16b8   :  { %4731 = vmatprep.subr.mxu1 %v4919_v6 }
0x16b9   :  { %4739 = vmatmul.mubr.msk.f32.vlgmr.msra.gmra.mxu0 %vm237_vm5, %v3169_v62 }
0x16ba   :  { %4748 = vmatprep.mubr.msk.f32.mxu0 %vm4920_vm4, %v4919_v6 }
0x1771   :  { %v2916_v63 = vpop.f32.mrf.mxu0 }
0x1773   :  { %v4720_v0 = vpop.f32.mrf.mxu0 }
0x1775   :  { %v2840_v2 = vpop.f32.mrf.mxu1  ;;  %v5423_v3 = vpop.f32.mrf.mxu0 }
0x1776   :  { %4723 = vmatprep.mubr.msk.f32.mxu1 %vm237_vm5, %v2840_v2 }
0x1777   :  { %v4715_v4 = vpop.f32.mrf.mxu1  ;;  %4724 = vmatmul.mubr.msk.f32.vlgmr.msra.gmra.mxu1 %vm237_vm5, %v2916_v63  ;;  %v5427_v7 = vpop.f32.mrf.mxu0 }
0x1778   :  { %4732 = vmatpush3.xpose.msk.msra.mxu1 %vm237_vm5, %v3093_v1  ;;  %4733 = vmatprep.mubr.msk.f32.mxu1 %vm4920_vm4, %v4919_v6 }
0x1779   :  { %v3242_v8 = vpop.f32.mrf.mxu0  ;;  %4741 = vmatprep.subr.mxu1 %v4919_v6 }
0x177a   :  { %v3249_v10 = vsel %vm237_vm5, %v3242_v8, -inf }
0x177b   :  { %3250 = vmax.xlane.f32.xlu1 %v3249_v10  ;;  %4734 = vmatmul.mubr.msk.f32.vlgmr.msra.gmra.mxu1 %vm237_vm5, %v3091_v9  ;;  %v4740_v11 = vpop.f32.mrf.mxu0 }
0x177c   :  { %4743 = vmatprep.mubr.msk.f32.mxu1 %vm4920_vm4, %v4919_v6 }
0x178c   :  { %3268 = vrot.lane.b32.xlu1 %v5338_v50, %s4929_s10 }
0x1790   :  { %3421 = vrot.lane.b32.xlu1 %v5289_v20, %s4926_s29 }
0x1794   :  { %3509 = vrot.lane.b32.xlu1 %v5338_v50, %s4930_s11 }
0x1798   :  { %3507 = vrot.lane.b32.xlu1 %v5338_v50, %s4931_s12 }
0x1804   :  { %v3251_v12 = vpop.xlane.xlu1 %3250 }
0x1805   :  { %v3253_v14 = vsub.f32 %v3242_v8, %v3251_v12 }
0x1807   :  { %v3256_v19 = vmul.f32 1.442695, %v3253_v14 }
0x1808   :  { %v3269_v16 = vpop.permute.xlu1 %3268 }
0x1809   :  { %4742 = vmatpush3.msra.mxu1 %v3269_v16  ;;  %4894 = vpow2.f32 %v3256_v19 }
0x180c   :  { %v3422_v17 = vpop.permute.xlu1 %3421 }
0x180d   :  { %4751 = vmatprep.subr.mxu1 %v3422_v17 }
0x1810   :  { %v3510_v47 = vpop.permute.xlu1 %3509 }
0x1814   :  { %v3508_v15 = vpop.permute.xlu1 %3507 }
0x1816   :  { %v4895_v30 = vpop.eup %4894 }
0x1817   :  { %v3261_v33 = vsel %vm237_vm5, %v4895_v30, 0.0 }
0x1837   :  { %v4725_v25 = vpop.f32.mrf.mxu1 }
0x1838   :  { %v3087_v63 = vadd.f32 %v5423_v3, %v4725_v25 }
0x1839   :  { %v5445_v26 = vpop.f32.mrf.mxu1 }
0x183a   :  { %v3082_v1 = vadd.f32 %v5427_v7, %v5445_v26 }
0x183b   :  { %v3164_v27 = vpop.f32.mrf.mxu1 }
0x183c   :  { %v3246_v20 = vsel %vm237_vm5, %v3164_v27, -inf }
0x183d   :  { %3247 = vmax.xlane.f32.xlu0 %v3246_v20  ;;  %v4735_v31 = vpop.f32.mrf.mxu1 }
0x1841   :  { %3262 = vadd.xlane.f32.xlu0 %v3261_v33 }
0x18c6   :  { %v3248_v34 = vpop.xlane.xlu0 %3247 }
0x18c7   :  { %v3252_v36 = vsub.f32 %v3164_v27, %v3248_v34 }
0x18c9   :  { %v3254_v39 = vmul.f32 1.442695, %v3252_v36 }
0x18ca   :  { %v3263_v42 = vpop.xlane.xlu0 %3262 }
0x18cb   :  { %4896 = vpow2.f32 %v3254_v39 }
0x18cc   :  { %4898 = vrcp.f32 %v3263_v42 }
0x18d8   :  { %v4897_v40 = vpop.eup %4896 }
0x18d9   :  { %v3258_v41 = vsel %vm237_vm5, %v4897_v40, 0.0  ;;  %v4899_v24 = vpop.eup %4898 }
0x18da   :  { %3259 = vadd.xlane.f32.xlu0 %v3258_v41  ;;  %v3267_v51 = vmul.f32 %v4899_v24, %v4895_v30 }
0x18f0   :  { %3344 = vrot.lane.b32.xlu0 %v5336_v48, %s4929_s10 }
0x18f4   :  { %3587 = vrot.lane.b32.xlu0 %v5336_v48, %s4930_s11 }
0x18f8   :  { %3585 = vrot.lane.b32.xlu0 %v5336_v48, %s4931_s12 }
0x1963   :  { %v3260_v43 = vpop.xlane.xlu0 %3259 }
0x1964   :  { %4900 = vrcp.f32 %v3260_v43 }
0x1967   :  { %v3345_v49 = vpop.permute.xlu0 %3344 }
0x1968   :  { %4747 = vmatpush3.msra.mxu0 %v3345_v49 }
0x1969   :  { %4749 = vmatmul.mubr.msk.f32.vlgmr.msra.gmra.mxu0 %vm237_vm5, %v3267_v51  ;;  %4756 = vmatprep.subr.mxu0 %v4919_v6 }
0x196a   :  { %4757 = vmatpush3.xpose.msk.msra.mxu0 %vm237_vm5, %v3510_v47  ;;  %4758 = vmatprep.mubr.msk.f32.mxu0 %vm4920_vm4, %v4919_v6 }
0x196b   :  { %4766 = vmatprep.subr.mxu0 %v4919_v6  ;;  %v3588_v56 = vpop.permute.xlu0 %3587 }
0x196d   :  { %4759 = vmatmul.mubr.msk.f32.vlgmr.msra.gmra.mxu0 %vm237_vm5, %v3508_v15 }
0x196e   :  { %4768 = vmatprep.mubr.msk.f32.mxu0 %vm4920_vm4, %v4919_v6 }
0x196f   :  { %v3586_v59 = vpop.permute.xlu0 %3585 }
0x1971   :  { %v4901_v28 = vpop.eup %4900 }
0x1972   :  { %v3266_v18 = vmul.f32 %v4901_v28, %v4897_v40 }
0x1974   :  { %4744 = vmatmul.mubr.msk.f32.vlgmr.msra.gmra.mxu1 %vm237_vm5, %v3266_v18 }
0x1975   :  { %4752 = vmatpush3.msra.mxu1 %v3422_v17 }
0x1976   :  { %4761 = vmatprep.subr.mxu1 %v4919_v6 }
0x1a29   :  { %v3416_v23 = vpop.f32.mrf.mxu0 }
0x1a2b   :  { %v4750_v53 = vpop.f32.mrf.mxu0 }
0x1a2d   :  { %v3581_v54 = vpop.f32.mrf.mxu0 }
0x1a2e   :  { %v3663_v55 = vsel %vm237_vm5, %v3581_v54, -inf }
0x1a2f   :  { %3664 = vmax.xlane.f32.xlu1 %v3663_v55  ;;  %v4760_v13 = vpop.f32.mrf.mxu0 }
0x1a34   :  { %v3340_v57 = vpop.f32.mrf.mxu1 }
0x1a35   :  { %4753 = vmatprep.mubr.msk.f32.mxu1 %vm237_vm5, %v3340_v57 }
0x1a36   :  { %v4745_v29 = vpop.f32.mrf.mxu1  ;;  %4754 = vmatmul.mubr.msk.f32.vlgmr.msra.gmra.mxu1 %vm237_vm5, %v3416_v23 }
0x1a37   :  { %4762 = vmatpush3.xpose.msk.msra.mxu1 %vm237_vm5, %v3588_v56  ;;  %4763 = vmatprep.mubr.msk.f32.mxu1 %vm4920_vm4, %v4919_v6  ;;  %v4327_v29 = vld [vmem:[%s5589_s3 + $0x68] sm:$0xff] }
0x1a38   :  { %4771 = vmatprep.subr.mxu1 %v4919_v6 }
0x1a3a   :  { %4764 = vmatmul.mubr.msk.f32.vlgmr.msra.gmra.mxu1 %vm237_vm5, %v3586_v59  ;;  %v4325_v59 = vld [vmem:[%s5589_s3 + $0x58] sm:$0xff] }
0x1a3b   :  { %4773 = vmatprep.mubr.msk.f32.mxu1 %vm4920_vm4, %v4919_v6 }
0x1ab8   :  { %v3665_v60 = vpop.xlane.xlu1 %3664 }
0x1ab9   :  { %v3669_v61 = vsub.f32 %v3581_v54, %v3665_v60  ;;  %v4323_v60 = vld [vmem:[%s5589_s3 + $0x48] sm:$0xff] }
0x1abb   :  { %v3671_v62 = vmul.f32 1.442695, %v3669_v61  ;;  %v4337_v61 = vld [vmem:[%s5592_s4 + $0x78] sm:$0xff] }
0x1abd   :  { %4902 = vpow2.f32 %v3671_v62  ;;  %v4336_v62 = vld [vmem:[%s5592_s4 + $0x70] sm:$0xff] }
0x1aca   :  { %v4903_v11 = vpop.eup %4902 }
0x1acb   :  { %v3675_v6 = vsel %vm237_vm5, %v4903_v11, 0.0 }
0x1af6   :  { %v4755_v0 = vpop.f32.mrf.mxu1 }
0x1af7   :  { %v3506_v2 = vadd.f32 %v4755_v0, %v3087_v63  ;;  %v4335_v63 = vld [vmem:[%s5592_s4 + $0x68] sm:$0xff]  ;;  %v4334_v0 = vld [vmem:[%s5592_s4 + $0x60] sm:$0xff] }
0x1af8   :  { %v3496_v4 = vpop.f32.mrf.mxu1 }
0x1af9   :  { %v3505_v8 = vadd.f32 %v3496_v4, %v3082_v1 }
0x1afa   :  { %v3659_v9 = vpop.f32.mrf.mxu1 }
0x1afb   :  { %v3666_v10 = vsel %vm237_vm5, %v3659_v9, -inf }
0x1afc   :  { %3667 = vmax.xlane.f32.xlu0 %v3666_v10  ;;  %v4765_v12 = vpop.f32.mrf.mxu1 }
0x1b00   :  { %3676 = vadd.xlane.f32.xlu0 %v3675_v6 }
0x1b16   :  { %3685 = vrot.lane.b32.xlu0 %v5338_v50, %s4932_s13 }
0x1b85   :  { %v3668_v3 = vpop.xlane.xlu0 %3667 }
0x1b86   :  { %v3670_v16 = vsub.f32 %v3659_v9, %v3668_v3  ;;  %v3967_v3 = vrot.slane %v5331_v45, %v1940_v38  ;;  %v4332_v38 = vld [vmem:[%s5592_s4 + $0x50] sm:$0xff] }
0x1b88   :  { %v3673_v17 = vmul.f32 1.442695, %v3670_v16 }
0x1b89   :  { %v3677_v14 = vpop.xlane.xlu0 %3676 }
0x1b8a   :  { %4904 = vpow2.f32 %v3673_v17 }
0x1b8b   :  { %4906 = vrcp.f32 %v3677_v14 }
0x1b8d   :  { %v3686_v7 = vpop.permute.xlu0 %3685 }
0x1b8e   :  { %4767 = vmatpush3.msra.mxu0 %v3686_v7 }
0x1b97   :  { %v4905_v19 = vpop.eup %4904 }
0x1b98   :  { %v4907_v25 = vpop.eup %4906  ;;  %v3678_v26 = vsel %vm237_vm5, %v4905_v19, 0.0 }
0x1b99   :  { %3679 = vadd.xlane.f32.xlu1 %v3678_v26  ;;  %v3683_v27 = vmul.f32 %v4907_v25, %v4903_v11  ;;  %v3961_v11 = vrot.slane %v5331_v45, %v1934_v37  ;;  %v4333_v37 = vld [vmem:[%s5592_s4 + $0x58] sm:$0xff]  ;;  %v4331_v26 = vld [vmem:[%s5592_s4 + $0x48] sm:$0xff] }
0x1b9b   :  { %4769 = vmatmul.mubr.msk.f32.vlgmr.msra.gmra.mxu0 %vm237_vm5, %v3683_v27  ;;  %v4330_v27 = vld [vmem:[%s5592_s4 + $0x40] sm:$0xff] }
0x1baa   :  { %3761 = vrot.lane.b32.xlu1 %v5336_v48, %s4932_s13 }
0x1bae   :  { %3838 = vrot.lane.b32.xlu1 %v5284_v21, %s4926_s29  ;;  %v3927_v21 = vrot.slane %v5331_v45, %v1899_v5 }
0x1c22   :  { %v3680_v50 = vpop.xlane.xlu1 %3679 }
0x1c23   :  { %4908 = vrcp.f32 %v3680_v50  ;;  %v3973_v50 = vrot.slane %v5331_v45, %v1946_v52 }
0x1c26   :  { %v3762_v20 = vpop.permute.xlu1 %3761 }
0x1c27   :  { %4772 = vmatpush3.msra.mxu1 %v3762_v20 }
0x1c2a   :  { %v3839_v30 = vpop.permute.xlu1 %3838 }
0x1c2b   :  { %4776 = vmatprep.subr.mxu0 %v3839_v30 }
0x1c2c   :  { %4777 = vmatpush3.msra.mxu0 %v3839_v30 }
0x1c2d   :  { %4792 = vmatprep.subr.mxu0 %v4337_v61 }
0x1c30   :  { %v4909_v31 = vpop.eup %4908 }
0x1c31   :  { %v3684_v33 = vmul.f32 %v4909_v31, %v4905_v19 }
0x1c33   :  { %4774 = vmatmul.mubr.msk.f32.vlgmr.msra.gmra.mxu1 %vm237_vm5, %v3684_v33 }
0x1c5b   :  { %v3757_v34 = vpop.f32.mrf.mxu0 }
0x1c5c   :  { %4778 = vmatprep.mubr.msk.f32.mxu0 %vm237_vm5, %v3757_v34 }
0x1c5d   :  { %v4770_v36 = vpop.f32.mrf.mxu0 }
0x1cf3   :  { %v3833_v39 = vpop.f32.mrf.mxu1 }
0x1cf4   :  { %4779 = vmatmul.mubr.msk.f32.vlgmr.msra.gmra.mxu0 %vm237_vm5, %v3833_v39  ;;  %v4060_v39 = vrot.slane %v5331_v45, %v2033_v58 }
0x1cf5   :  { %v4775_v48 = vpop.f32.mrf.mxu1  ;;  %4793 = vmatpush3.msra.mxu0 %v4337_v61 }
0x1cf6   :  { %4794 = vmatprep.subr.mxu0 %v4336_v62 }
0x1cf7   :  { %4795 = vmatpush3.msra.mxu0 %v4336_v62  ;;  %v4173_v62 = vrot.slane %v5331_v45, %v2147_v32 }
0x1cf8   :  { %4796 = vmatprep.subr.mxu0 %v4335_v63 }
0x1cf9   :  { %4797 = vmatpush3.msra.mxu0 %v4335_v63 }
0x1cfa   :  { %4798 = vmatprep.subr.mxu0 %v4334_v0 }
0x1cfb   :  { %4799 = vmatpush3.msra.mxu0 %v4334_v0 }
0x1cfc   :  { %4800 = vmatprep.subr.mxu0 %v4333_v37 }
0x1cfd   :  { %4801 = vmatpush3.msra.mxu0 %v4333_v37 }
0x1cfe   :  { %4802 = vmatprep.subr.mxu0 %v4332_v38 }
0x1cff   :  { %4803 = vmatpush3.msra.mxu0 %v4332_v38 }
0x1d00   :  { %4804 = vmatprep.subr.mxu0 %v4331_v26 }
0x1d01   :  { %4805 = vmatpush3.msra.mxu0 %v4331_v26 }
0x1d02   :  { %4806 = vmatprep.subr.mxu0 %v4330_v27 }
0x1d03   :  { %4807 = vmatpush3.msra.mxu0 %v4330_v27 }
0x1db4   :  { %v4780_v40 = vpop.f32.mrf.mxu0 }
0x1db5   :  { %v3923_v41 = vadd.f32 %v4780_v40, %v3506_v2 }
0x1db6   :  { %v3913_v42 = vpop.f32.mrf.mxu0 }
0x1db7   :  { %v3929_v43 = vadd.f32 %v3927_v21, %v3923_v41  ;;  %v3922_v24 = vadd.f32 %v3913_v42, %v3505_v8 }
0x1db9   :  { %v3928_v47 = vadd.f32 %v3927_v21, %v3922_v24  ;;  %v3931_v49 = vadd.f32 %v3929_v43, %v5320_v46 }
0x1dbb   :  { %v3935_v51 = vsel %vm152_vm3, %v3931_v49, 0.0  ;;  %v3930_v15 = vadd.f32 %v3928_v47, %v5318_v44  ;;  %v4329_v44 = vld [vmem:[%s5589_s3 + $0x78] sm:$0xff] }
0x1dbc   :  { %3936 = vadd.xlane.f32.xlu1 %v3935_v51  ;;  %4781 = vmatprep.subr.mxu1 %v4329_v44 }
0x1dbd   :  { %v3932_v28 = vsel %vm152_vm3, %v3930_v15, 0.0  ;;  %4782 = vmatpush3.msra.mxu1 %v4329_v44 }
0x1dbe   :  { %3933 = vadd.xlane.f32.xlu0 %v3932_v28  ;;  %4783 = vmatprep.subr.mxu1 %v4327_v29 }
0x1dbf   :  { %4784 = vmatpush3.msra.mxu1 %v4327_v29 }
0x1dc0   :  { %4785 = vmatprep.subr.mxu1 %v4325_v59 }
0x1dc1   :  { %4786 = vmatpush3.msra.mxu1 %v4325_v59 }
0x1dc2   :  { %4787 = vmatprep.subr.mxu1 %v4323_v60 }
0x1dc3   :  { %4788 = vmatpush3.msra.mxu1 %v4323_v60 }
0x1e45   :  { %v3937_v18 = vpop.xlane.xlu1 %3936 }
0x1e46   :  { %v3939_v23 = vmul.f32 0.03125, %v3937_v18 }
0x1e47   :  { %v3934_v53 = vpop.xlane.xlu0 %3933 }
0x1e48   :  { %v3938_v5 = vmul.f32 0.03125, %v3934_v53  ;;  %v3941_v54 = vsub.f32 %v3931_v49, %v3939_v23 }
0x1e4a   :  { %v3940_v55 = vsub.f32 %v3930_v15, %v3938_v5  ;;  %v3943_v57 = vmul.f32 %v3941_v54, %v3941_v54 }
0x1e4c   :  { %v3942_v13 = vmul.f32 %v3940_v55, %v3940_v55  ;;  %v3947_v46 = vsel %vm152_vm3, %v3943_v57, 0.0 }
0x1e4e   :  { %v3944_v56 = vsel %vm152_vm3, %v3942_v13, 0.0  ;;  %v4183_v13 = vld [vmem:[%s5593_s6 + $0x8] sm:$0xff] }
0x1e4f   :  { %3945 = vadd.xlane.f32.xlu0 %v3944_v56  ;;  %v4182_v56 = vld [vmem:[%s5593_s6] sm:$0xff] }
0x1e53   :  { %3948 = vadd.xlane.f32.xlu0 %v3947_v46 }
0x1ed8   :  { %v3946_v1 = vpop.xlane.xlu0 %3945 }
0x1ed9   :  { %v3950_v2 = vmul.f32 0.03125, %v3946_v1 }
0x1edb   :  { %v3952_v4 = vadd.f32 1e-05, %v3950_v2 }
0x1edc   :  { %v3949_v8 = vpop.xlane.xlu0 %3948 }
0x1edd   :  { %4910 = vrsqrt.f32 %v3952_v4  ;;  %v3951_v9 = vmul.f32 0.03125, %v3949_v8  ;;  %v4179_v4 = vrot.slane %v5331_v45, %v2153_v35 }
0x1edf   :  { %v3953_v10 = vadd.f32 1e-05, %v3951_v9 }
0x1ee1   :  { %4912 = vrsqrt.f32 %v3953_v10 }
0x1eea   :  { %v4911_v12 = vpop.eup %4910 }
0x1eeb   :  { %v3956_v6 = vmul.f32 %v4911_v12, %v3940_v55  ;;  %v4184_v55 = vld [vmem:[%s5593_s6 + $0x10] sm:$0xff] }
0x1eed   :  { %v3962_v16 = vmul.f32 %v3961_v11, %v3956_v6 }
0x1eee   :  { %v4913_v17 = vpop.eup %4912 }
0x1eef   :  { %v3957_v14 = vmul.f32 %v4913_v17, %v3941_v54  ;;  %v3968_v7 = vadd.f32 %v3967_v3, %v3962_v16  ;;  %v4185_v54 = vld [vmem:[%s5593_s6 + $0x18] sm:$0xff] }
0x1ef0   :  { %4811 = vmatprep.subr.mxu1 %v4185_v54 }
0x1ef1   :  { %v3963_v19 = vmul.f32 %v3961_v11, %v3957_v14  ;;  %4789 = vmatprep.mubr.msk.f32.mxu1 %vm152_vm3, %v3968_v7  ;;  %v4377_v11 = vld [vmem:[%s5594_s7] ss:$0 sm:$0xff] }
0x1ef3   :  { %v3969_v25 = vadd.f32 %v3967_v3, %v3963_v19 }
0x1ef5   :  { %4790 = vmatmul.mubr.msk.f32.vlgmr.msra.gmra.mxu1 %vm152_vm3, %v3969_v25 }
0x1ef6   :  { %4812 = vmatpush3.msra.mxu1 %v4185_v54 }
0x1ef7   :  { %4813 = vmatprep.subr.mxu1 %v4184_v55 }
0x1ef8   :  { %4814 = vmatpush3.msra.mxu1 %v4184_v55 }
0x1ef9   :  { %4815 = vmatprep.subr.mxu1 %v4183_v13 }
0x1efa   :  { %4816 = vmatpush3.msra.mxu1 %v4183_v13 }
0x1efb   :  { %4817 = vmatprep.subr.mxu1 %v4182_v56 }
0x1efc   :  { %4818 = vmatpush3.msra.mxu1 %v4182_v56 }
0x1fb5   :  { %v4791_v20 = vpop.f32.mrf.mxu1 }
0x1fb6   :  { %v4052_v30 = vadd.f32 %v4791_v20, %v3973_v50 }
0x1fb7   :  { %v4046_v31 = vpop.f32.mrf.mxu1 }
0x1fb8   :  { %v4047_v33 = vadd.f32 %v4046_v31, %v3973_v50  ;;  %v4056_v36 = vmax.f32 %v4052_v30, 0.0 }
0x1fba   :  { %v4055_v34 = vmax.f32 %v4047_v33, 0.0 }
0x1fbc   :  { %4808 = vmatprep.mubr.msk.f32.mxu0 %vm2035_vm6, %v4055_v34 }
0x1fbd   :  { %4809 = vmatmul.mubr.msk.f32.vlgmr.msra.gmra.mxu0 %vm2035_vm6, %v4056_v36 }
0x207d   :  { %v4810_v48 = vpop.f32.mrf.mxu0 }
0x207e   :  { %v4139_v21 = vadd.f32 %v4810_v48, %v4060_v39 }
0x207f   :  { %v4133_v40 = vpop.f32.mrf.mxu0 }
0x2080   :  { %v4143_v41 = vadd.f32 %v4139_v21, %v3969_v25  ;;  %v4134_v42 = vadd.f32 %v4133_v40, %v4060_v39 }
0x2082   :  { %v4147_v52 = vsel %vm152_vm3, %v4143_v41, 0.0  ;;  %v4142_v43 = vadd.f32 %v4134_v42, %v3968_v7 }
0x2083   :  { %4148 = vadd.xlane.f32.xlu0 %v4147_v52 }
0x2084   :  { %v4144_v24 = vsel %vm152_vm3, %v4142_v43, 0.0 }
0x2085   :  { %4145 = vadd.xlane.f32.xlu1 %v4144_v24 }
0x210c   :  { %v4149_v47 = vpop.xlane.xlu0 %4148 }
0x210d   :  { %v4151_v49 = vmul.f32 0.03125, %v4149_v47 }
0x210e   :  { %v4146_v51 = vpop.xlane.xlu1 %4145 }
0x210f   :  { %v4153_v15 = vsub.f32 %v4143_v41, %v4151_v49  ;;  %v4150_v28 = vmul.f32 0.03125, %v4146_v51 }
0x2111   :  { %v4152_v18 = vsub.f32 %v4142_v43, %v4150_v28  ;;  %v4155_v23 = vmul.f32 %v4153_v15, %v4153_v15 }
0x2113   :  { %v4159_v58 = vsel %vm152_vm3, %v4155_v23, 0.0  ;;  %v4154_v53 = vmul.f32 %v4152_v18, %v4152_v18 }
0x2114   :  { %4160 = vadd.xlane.f32.xlu0 %v4159_v58 }
0x2115   :  { %v4156_v5 = vsel %vm152_vm3, %v4154_v53, 0.0 }
0x2116   :  { %4157 = vadd.xlane.f32.xlu1 %v4156_v5 }
0x219d   :  { %v4161_v57 = vpop.xlane.xlu0 %4160 }
0x219e   :  { %v4163_v46 = vmul.f32 0.03125, %v4161_v57 }
0x219f   :  { %v4158_v44 = vpop.xlane.xlu1 %4157 }
0x21a0   :  { %v4165_v29 = vadd.f32 1e-05, %v4163_v46  ;;  %v4162_v59 = vmul.f32 0.03125, %v4158_v44 }
0x21a2   :  { %4914 = vrsqrt.f32 %v4165_v29  ;;  %v4164_v60 = vadd.f32 1e-05, %v4162_v59 }
0x21a4   :  { %4916 = vrsqrt.f32 %v4164_v60 }
0x21af   :  { %v4915_v61 = vpop.eup %4914 }
0x21b0   :  { %v4169_v63 = vmul.f32 %v4915_v61, %v4153_v15 }
0x21b1   :  { %v4917_v0 = vpop.eup %4916 }
0x21b2   :  { %v4168_v1 = vmul.f32 %v4917_v0, %v4152_v18  ;;  %v4175_v2 = vmul.f32 %v4173_v62, %v4169_v63 }
0x21b4   :  { %v4174_v8 = vmul.f32 %v4173_v62, %v4168_v1  ;;  %v4181_v10 = vadd.f32 %v4179_v4, %v4175_v2 }
0x21b6   :  { %v4180_v9 = vadd.f32 %v4179_v4, %v4174_v8 }
0x21b8   :  { %4819 = vmatprep.mubr.msk.f32.mxu1 %vm152_vm3, %v4180_v9 }
0x21b9   :  { %4820 = vmatmul.mubr.msk.f32.vlgmr.msra.gmra.mxu1 %vm152_vm3, %v4181_v10 }
0x2279   :  { %v4821_v32 = vpop.f32.mrf.mxu1 }
0x227a   :  { %v4271_v12 = vadd.f32 %v4821_v32, %v4377_v11 }
0x227b   :  { %v4265_v6 = vpop.f32.mrf.mxu1 }
0x227c   :  { %4275 = vst [vmem:[%s5595_s8 + $0x8] sm:$0xff] %v4271_v12  ;;  %v4266_v22 = vadd.f32 %v4377_v11, %v4265_v6 }
0x227e   :  { %4274 = vst [vmem:[%s5595_s8] sm:$0xff] %v4266_v22 }

</bundles_post_ra>
